<compile_context>
chip_gen: v7x
topology: tpu7x:2x2x1
jax: 0.10.0
libtpu: 0.0.40
codegen_flags: <defaults>
</compile_context>

<pallas_src>
import functools

import jax
import jax.numpy as jnp
from jax import lax
from jax.experimental import pallas as pl
from jax.experimental.pallas import tpu as pltpu

F32 = jnp.float32
BF16 = jnp.bfloat16


def _round_up(n, m):
    return ((n + m - 1) // m) * m


def _pad_axis(a, axis, target):
    pad = target - a.shape[axis]
    if pad == 0:
        return a
    widths = [(0, 0)] * a.ndim
    widths[axis] = (0, pad)
    return jnp.pad(a, widths)


def _reorder_gates(w, H, H_pad):
    """(rows, 4H) packed (i, f, g, o) -> (rows, 4*H_pad) packed (i, f, o, g).

    Each gate block is zero-padded from H to H_pad columns so in-kernel gate
    slices are 128-lane aligned and padded lanes stay inert.
    """
    i, f, g, o = (w[:, k * H:(k + 1) * H] for k in range(4))
    return jnp.concatenate([_pad_axis(blk, 1, H_pad) for blk in (i, f, o, g)],
                           axis=1)


def lstm_chunk_kernel(x_ref, h0_ref, c0_ref, wih_ref, whh_ref, b_ref,
                      wout_ref, bout_ref, scores_ref, h_scr, c_scr, xp_scr, *,
                      t_chunk, b_block, h_pad, seq_len, num_chunks, unroll):
    """One grid step (b, c) processes t_chunk time steps of one batch block.

    x_ref:    (t_chunk*b_block, D_pad) bf16 time-major rows for this chunk
    h0/c0:    (b_block, h_pad)         f32 initial state
    wih_ref:  (D_pad, 4*h_pad)         bf16, gates packed (i, f, o, g)
    whh_ref:  (h_pad, 4*h_pad)         bf16
    b_ref:    (1, 4*h_pad)             f32   b_ih + b_hh
    wout_ref: (h_pad, o_pad)           bf16
    bout_ref: (1, o_pad)               f32
    scores_ref: (b_block, o_pad)       f32, written on the last chunk only
    h_scr/c_scr: f32 VMEM scratch carrying the recurrent state across chunks
    xp_scr:   (t_chunk*b_block, 4*h_pad) f32 hoisted input projection
    """
    chunk = pl.program_id(1)

    @pl.when(chunk == 0)
    def _():
        h_scr[...] = h0_ref[...]
        c_scr[...] = c0_ref[...]

    # Hoisted input projection (bf16 MXU, f32 accumulate) with the bias folded
    # in; stored to VMEM scratch so the serial loop only does h @ W_hh.
    xp_scr[...] = (
        jnp.dot(x_ref[...], wih_ref[...], preferred_element_type=F32)
        + b_ref[...])

    def step(lt, carry):
        h, c = carry
        start = pl.multiple_of(lt * b_block, b_block)
        z = xp_scr[pl.ds(start, b_block), :] + jnp.dot(
            h.astype(BF16), whh_ref[...], preferred_element_type=F32)
        s = jax.nn.sigmoid(z[:, :3 * h_pad])   # i | f | o in one contiguous pass
        g = jnp.tanh(z[:, 3 * h_pad:])
        i_g = s[:, 0 * h_pad:1 * h_pad]
        f_g = s[:, 1 * h_pad:2 * h_pad]
        o_g = s[:, 2 * h_pad:3 * h_pad]
        c_new = f_g * c + i_g * g
        h_new = o_g * jnp.tanh(c_new)
        return h_new, c_new

    def run(n_steps):
        h, c = lax.fori_loop(0, n_steps, step, (h_scr[...], c_scr[...]),
                             unroll=max(1, min(unroll, n_steps)))
        h_scr[...] = h
        c_scr[...] = c

    rem = seq_len % t_chunk                    # static Python int
    if rem == 0:
        run(t_chunk)
    elif num_chunks == 1:
        run(rem)
    else:
        # Tail handling confined to the last chunk: non-last chunks run the
        # clean unmasked loop; the last chunk simply runs fewer (static) steps.
        @pl.when(chunk < num_chunks - 1)
        def _():
            run(t_chunk)

        @pl.when(chunk == num_chunks - 1)
        def _():
            run(rem)

    @pl.when(chunk == num_chunks - 1)
    def _():
        scores_ref[...] = (
            jnp.dot(h_scr[...].astype(BF16), wout_ref[...],
                    preferred_element_type=F32) + bout_ref[...])


def rnn_model_forward(input_seq, hidden_state, params, *, t_chunk=None,
                      b_block=None, unroll=8):
    """Pallas-backed equivalent of RNNModel.forward (LSTM cell, eval mode).

    input_seq:    (T, B, D)
    hidden_state: tuple (h0, c0) each of shape (1, B, H)
    returns: (scores (B, O), dummy_weights (B, T))
    """
    T, B, D = input_seq.shape
    h0, c0 = hidden_state
    h0 = h0[0].astype(F32)                     # (B, H)
    c0 = c0[0].astype(F32)
    H = h0.shape[1]
    O = params["w_out"].shape[0]

    # Padded, TPU-aligned shapes.
    B_pad8 = max(8, _round_up(B, 8))
    if b_block is None:
        b_block = B_pad8 if B_pad8 <= 64 else 64
    b_block = max(8, _round_up(b_block, 8))
    B_pad = _round_up(B_pad8, b_block)
    nb = B_pad // b_block
    D_pad = _round_up(D, 128)
    H_pad = _round_up(H, 128)
    O_pad = _round_up(O, 128)
    if t_chunk is None:
        t_chunk = 64
    t_chunk = max(1, min(t_chunk, T))
    num_chunks = -(-T // t_chunk)
    T_pad = num_chunks * t_chunk

    # ---- wrapper-side layout plumbing (zero runtime cost inside the kernel) --
    x = _pad_axis(_pad_axis(_pad_axis(input_seq.astype(BF16), 0, T_pad),
                            1, B_pad), 2, D_pad)       # (T_pad, B_pad, D_pad)
    # Re-order rows so grid step (b, c) reads one dense lane-aligned slab of
    # (t_chunk*b_block, D_pad), time-major within the chunk.
    x = x.reshape(num_chunks, t_chunk, nb, b_block, D_pad)
    x = jnp.transpose(x, (2, 0, 1, 3, 4))
    x2d = x.reshape(nb * num_chunks * t_chunk * b_block, D_pad)

    h0_p = _pad_axis(_pad_axis(h0, 0, B_pad), 1, H_pad)
    c0_p = _pad_axis(_pad_axis(c0, 0, B_pad), 1, H_pad)

    w_ih_t = params["w_ih"].astype(F32).T      # (D, 4H) gates (i, f, g, o)
    w_hh_t = params["w_hh"].astype(F32).T      # (H, 4H)
    bias = (params["b_ih"] + params["b_hh"]).astype(F32).reshape(1, 4 * H)

    wih_p = _pad_axis(_reorder_gates(w_ih_t, H, H_pad), 0, D_pad).astype(BF16)
    whh_p = _pad_axis(_reorder_gates(w_hh_t, H, H_pad), 0, H_pad).astype(BF16)
    b_p = _reorder_gates(bias, H, H_pad)                           # (1,4H_pad) f32
    wout_p = _pad_axis(_pad_axis(params["w_out"].astype(F32).T, 0, H_pad),
                       1, O_pad).astype(BF16)                      # (H_pad, O_pad)
    bout_p = _pad_axis(params["b_out"].astype(F32).reshape(1, O), 1, O_pad)

    # Explicit VMEM budget (x double-buffered, invariants single-buffered).
    bfb, f32b = 2, 4
    vmem_bytes = (
        2 * t_chunk * b_block * D_pad * bfb          # x chunk (double-buffered)
        + D_pad * 4 * H_pad * bfb                    # W_ih
        + H_pad * 4 * H_pad * bfb                    # W_hh
        + 8 * 4 * H_pad * f32b                       # bias (sublane-padded)
        + H_pad * O_pad * bfb                        # W_out
        + 8 * O_pad * f32b                           # b_out
        + 2 * b_block * H_pad * f32b                 # h0, c0
        + 2 * b_block * O_pad * f32b                 # scores out block
        + 2 * b_block * H_pad * f32b                 # h/c scratch
        + t_chunk * b_block * 4 * H_pad * f32b)      # xp scratch
    vmem_limit = int(min(max(2 * vmem_bytes, 16 * 2**20), 64 * 2**20))

    kern = functools.partial(
        lstm_chunk_kernel, t_chunk=t_chunk, b_block=b_block, h_pad=H_pad,
        seq_len=T, num_chunks=num_chunks, unroll=unroll)

    inv = dict(pipeline_mode=pl.Buffered(1))     # single-buffer invariant inputs

    scores_p = pl.pallas_call(
        kern,
        out_shape=jax.ShapeDtypeStruct((B_pad, O_pad), F32),
        grid=(nb, num_chunks),
        in_specs=[
            pl.BlockSpec((t_chunk * b_block, D_pad),
                         lambda b, c: (b * num_chunks + c, 0)),            # x
            pl.BlockSpec((b_block, H_pad), lambda b, c: (b, 0), **inv),    # h0
            pl.BlockSpec((b_block, H_pad), lambda b, c: (b, 0), **inv),    # c0
            pl.BlockSpec((D_pad, 4 * H_pad), lambda b, c: (0, 0), **inv),  # W_ih
            pl.BlockSpec((H_pad, 4 * H_pad), lambda b, c: (0, 0), **inv),  # W_hh
            pl.BlockSpec((1, 4 * H_pad), lambda b, c: (0, 0), **inv),      # bias
            pl.BlockSpec((H_pad, O_pad), lambda b, c: (0, 0), **inv),      # W_out
            pl.BlockSpec((1, O_pad), lambda b, c: (0, 0), **inv),          # b_out
        ],
        out_specs=pl.BlockSpec((b_block, O_pad), lambda b, c: (b, 0)),
        scratch_shapes=[
            pltpu.VMEM((b_block, H_pad), F32),                 # h carry
            pltpu.VMEM((b_block, H_pad), F32),                 # c carry
            pltpu.VMEM((t_chunk * b_block, 4 * H_pad), F32),   # xp (projection)
        ],
        compiler_params=pltpu.CompilerParams(
            dimension_semantics=("parallel", "arbitrary"),
            vmem_limit_bytes=vmem_limit),
    )(x2d, h0_p, c0_p, wih_p, whh_p, b_p, wout_p, bout_p)

    scores = scores_p[:B, :O]
    dummy_weights = jnp.zeros((B, T), dtype=input_seq.dtype)
    return scores, dummy_weights


def init_params(key, input_dim, hidden_size, output_dim):
    """Deterministic init mimicking PyTorch's U(-1/sqrt(H), 1/sqrt(H))."""
    k = 1.0 / jnp.sqrt(hidden_size)
    ks = jax.random.split(key, 6)
    u = lambda kk, shape: jax.random.uniform(kk, shape, jnp.float32, -k, k)
    return {
        "w_ih": u(ks[0], (4 * hidden_size, input_dim)),
        "w_hh": u(ks[1], (4 * hidden_size, hidden_size)),
        "b_ih": u(ks[2], (4 * hidden_size,)),
        "b_hh": u(ks[3], (4 * hidden_size,)),
        "w_out": u(ks[4], (output_dim, hidden_size)),
        "b_out": u(ks[5], (output_dim,)),
    }


def rnn_model_forward_ref(input_seq, hidden_state, params,
                          matmul_dtype=jnp.float32):
    """Pure-JAX reference (PyTorch gate order i,f,g,o) for validation.

    matmul_dtype=bf16 mirrors the kernel's bf16 MXU operands (f32 accumulate,
    f32 state/gate math) for a tight numeric comparison.
    """
    md = matmul_dtype
    h = hidden_state[0][0].astype(F32)
    c = hidden_state[1][0].astype(F32)
    H = h.shape[1]
    w_ih_t = params["w_ih"].T.astype(md)
    w_hh_t = params["w_hh"].T.astype(md)
    b = (params["b_ih"] + params["b_hh"]).astype(F32)
    for t in range(input_seq.shape[0]):
        z = (jnp.dot(input_seq[t].astype(md), w_ih_t,
                     preferred_element_type=F32)
             + jnp.dot(h.astype(md), w_hh_t, preferred_element_type=F32) + b)
        i = jax.nn.sigmoid(z[:, 0 * H:1 * H])
        f = jax.nn.sigmoid(z[:, 1 * H:2 * H])
        g = jnp.tanh(z[:, 2 * H:3 * H])
        o = jax.nn.sigmoid(z[:, 3 * H:4 * H])
        c = f * c + i * g
        h = o * jnp.tanh(c)
    return (jnp.dot(h.astype(md), params["w_out"].T.astype(md),
                    preferred_element_type=F32) + params["b_out"].astype(F32))


if __name__ == "__main__":
    # Small shapes consistent with the module's forward.
    T, B, D, H, O = 8, 2, 16, 32, 4

    key = jax.random.PRNGKey(0)
    k_x, k_p = jax.random.split(key)

    input_seq = jax.random.normal(k_x, (T, B, D), dtype=jnp.float32)
    hidden_state = (jnp.zeros((1, B, H), jnp.float32),
                    jnp.zeros((1, B, H), jnp.float32))  # init_hidden (LSTM)
    params = init_params(k_p, D, H, O)

    scores, dummy_weights = rnn_model_forward(input_seq, hidden_state, params)
    scores = jax.block_until_ready(scores)
    dummy_weights = jax.block_until_ready(dummy_weights)
    assert scores.shape == (B, O)
    assert dummy_weights.shape == (B, T)

    ref_bf = rnn_model_forward_ref(input_seq, hidden_state, params,
                                   matmul_dtype=jnp.bfloat16)
    ref_f32 = rnn_model_forward_ref(input_seq, hidden_state, params)
    assert jnp.allclose(scores, ref_bf, atol=2e-3, rtol=2e-3)
    assert jnp.allclose(scores, ref_f32, atol=5e-2, rtol=5e-2)

    # Exercise the multi-chunk grid path (T not divisible by t_chunk) with a
    # non-zero initial state.
    T2 = 20
    k_x2, k_h, k_c = jax.random.split(jax.random.PRNGKey(1), 3)
    x2 = jax.random.normal(k_x2, (T2, B, D), dtype=jnp.float32)
    hs2 = (0.1 * jax.random.normal(k_h, (1, B, H), jnp.float32),
           0.1 * jax.random.normal(k_c, (1, B, H), jnp.float32))
    s2, w2 = rnn_model_forward(x2, hs2, params, t_chunk=8)
    s2 = jax.block_until_ready(s2)
    assert s2.shape == (B, O) and w2.shape == (B, T2)
    r2_bf = rnn_model_forward_ref(x2, hs2, params, matmul_dtype=jnp.bfloat16)
    r2_f32 = rnn_model_forward_ref(x2, hs2, params)
    assert jnp.allclose(s2, r2_bf, atol=2e-3, rtol=2e-3)
    assert jnp.allclose(s2, r2_f32, atol=5e-2, rtol=5e-2)

    print("KERNEL_OK")
</pallas_src>

<mosaic_0001>
module attributes {stable_mosaic.version = 11 : i64} {
  func.func @lstm_chunk_kernel(%arg0: i32, %arg1: i32, %arg2: memref<64x128xbf16, #tpu.memory_space<vmem>>, %arg3: memref<8x128xf32, #tpu.memory_space<vmem>>, %arg4: memref<8x128xf32, #tpu.memory_space<vmem>>, %arg5: memref<128x512xbf16, #tpu.memory_space<vmem>>, %arg6: memref<128x512xbf16, #tpu.memory_space<vmem>>, %arg7: memref<1x512xf32, #tpu.memory_space<vmem>>, %arg8: memref<128x128xbf16, #tpu.memory_space<vmem>>, %arg9: memref<1x128xf32, #tpu.memory_space<vmem>>, %arg10: memref<8x128xf32, #tpu.memory_space<vmem>>, %arg11: memref<8x128xf32, #tpu.memory_space<vmem>>, %arg12: memref<8x128xf32, #tpu.memory_space<vmem>>, %arg13: memref<64x512xf32, #tpu.memory_space<vmem>>) attributes {dimension_semantics = [#tpu.dimension_semantics<parallel>, #tpu.dimension_semantics<arbitrary>], iteration_bounds = array<i64: 1, 1>, scalar_prefetch = 0 : i64, scratch_operands = 3 : i64, tpu.core_type = #tpu.core_type<tc>, window_params = [{transform_indices = @transform_0, window_bounds = array<i64: 64, 128>}, {pipeline_mode = #tpu.pipeline_mode<synchronous>, transform_indices = @transform_1, window_bounds = array<i64: 8, 128>}, {pipeline_mode = #tpu.pipeline_mode<synchronous>, transform_indices = @transform_2, window_bounds = array<i64: 8, 128>}, {pipeline_mode = #tpu.pipeline_mode<synchronous>, transform_indices = @transform_3, window_bounds = array<i64: 128, 512>}, {pipeline_mode = #tpu.pipeline_mode<synchronous>, transform_indices = @transform_4, window_bounds = array<i64: 128, 512>}, {pipeline_mode = #tpu.pipeline_mode<synchronous>, transform_indices = @transform_5, window_bounds = array<i64: 1, 512>}, {pipeline_mode = #tpu.pipeline_mode<synchronous>, transform_indices = @transform_6, window_bounds = array<i64: 128, 128>}, {pipeline_mode = #tpu.pipeline_mode<synchronous>, transform_indices = @transform_7, window_bounds = array<i64: 1, 128>}, {transform_indices = @transform_8, window_bounds = array<i64: 8, 128>}]} {
    %c0_i32 = arith.constant 0 : i32
    %0 = arith.cmpi eq, %arg1, %c0_i32 : i32
    %1 = arith.extui %0 : i1 to i32
    %c0_i32_0 = arith.constant 0 : i32
    %2 = arith.cmpi ne, %1, %c0_i32_0 : i32
    scf.if %2 {
      %c0_67 = arith.constant 0 : index
      %c0_68 = arith.constant 0 : index
      %209 = vector.load %arg3[%c0_67, %c0_68] : memref<8x128xf32, #tpu.memory_space<vmem>>, vector<8x128xf32>
      %c0_69 = arith.constant 0 : index
      %c0_70 = arith.constant 0 : index
      %210 = vector.load %arg11[%c0_69, %c0_70] : memref<8x128xf32, #tpu.memory_space<vmem>>, vector<8x128xf32>
      tpu.vector_store %arg11[%c0_69, %c0_70], %209 {strides = array<i32>} : memref<8x128xf32, #tpu.memory_space<vmem>>, vector<8x128xf32>,
      %c0_71 = arith.constant 0 : index
      %c0_72 = arith.constant 0 : index
      %211 = vector.load %arg4[%c0_71, %c0_72] : memref<8x128xf32, #tpu.memory_space<vmem>>, vector<8x128xf32>
      %c0_73 = arith.constant 0 : index
      %c0_74 = arith.constant 0 : index
      %212 = vector.load %arg12[%c0_73, %c0_74] : memref<8x128xf32, #tpu.memory_space<vmem>>, vector<8x128xf32>
      tpu.vector_store %arg12[%c0_73, %c0_74], %211 {strides = array<i32>} : memref<8x128xf32, #tpu.memory_space<vmem>>, vector<8x128xf32>,
    } else {
    }
    %c0 = arith.constant 0 : index
    %c0_1 = arith.constant 0 : index
    %3 = vector.load %arg2[%c0, %c0_1] : memref<64x128xbf16, #tpu.memory_space<vmem>>, vector<64x128xbf16>
    %c0_2 = arith.constant 0 : index
    %c0_3 = arith.constant 0 : index
    %4 = vector.load %arg5[%c0_2, %c0_3] : memref<128x512xbf16, #tpu.memory_space<vmem>>, vector<128x512xbf16>
    %cst = arith.constant dense<0.000000e+00> : vector<64x512xf32>
    %5 = tpu.matmul %3, %4, %cst {dimension_numbers = #tpu.dot_dimension_numbers<[1], [0], [0], [1], [0, 0, 1, 1], [], []>} : vector<64x128xbf16>, vector<128x512xbf16>, vector<64x512xf32> -> vector<64x512xf32>
    %c0_4 = arith.constant 0 : index
    %c0_5 = arith.constant 0 : index
    %6 = vector.load %arg7[%c0_4, %c0_5] : memref<1x512xf32, #tpu.memory_space<vmem>>, vector<1x512xf32>
    %7 = vector.broadcast %6 : vector<1x512xf32> to vector<64x512xf32>
    %8 = arith.addf %5, %7 : vector<64x512xf32>
    %c0_6 = arith.constant 0 : index
    %c0_7 = arith.constant 0 : index
    %9 = vector.load %arg13[%c0_6, %c0_7] : memref<64x512xf32, #tpu.memory_space<vmem>>, vector<64x512xf32>
    tpu.vector_store %arg13[%c0_6, %c0_7], %8 {strides = array<i32>} : memref<64x512xf32, #tpu.memory_space<vmem>>, vector<64x512xf32>,
    %c0_8 = arith.constant 0 : index
    %c0_9 = arith.constant 0 : index
    %10 = vector.load %arg11[%c0_8, %c0_9] : memref<8x128xf32, #tpu.memory_space<vmem>>, vector<8x128xf32>
    %c0_10 = arith.constant 0 : index
    %c0_11 = arith.constant 0 : index
    %11 = vector.load %arg12[%c0_10, %c0_11] : memref<8x128xf32, #tpu.memory_space<vmem>>, vector<8x128xf32>
    %c0_i32_12 = arith.constant 0 : i32
    %c8_i32 = arith.constant 8 : i32
    %12 = arith.muli %c0_i32_12, %c8_i32 : i32
    %13 = tpu.assume_multiple %12, 8 : i32
    %14 = arith.index_cast %13 : i32 to index
    %c0_13 = arith.constant 0 : index
    %15 = vector.load %arg13[%14, %c0_13] : memref<64x512xf32, #tpu.memory_space<vmem>>, vector<8x512xf32>
    %16 = arith.truncf %10 : vector<8x128xf32> to vector<8x128xbf16>
    %c0_14 = arith.constant 0 : index
    %c0_15 = arith.constant 0 : index
    %17 = vector.load %arg6[%c0_14, %c0_15] : memref<128x512xbf16, #tpu.memory_space<vmem>>, vector<128x512xbf16>
    %cst_16 = arith.constant dense<0.000000e+00> : vector<8x512xf32>
    %18 = tpu.matmul %16, %17, %cst_16 {dimension_numbers = #tpu.dot_dimension_numbers<[1], [0], [0], [1], [0, 0, 1, 1], [], []>} : vector<8x128xbf16>, vector<128x512xbf16>, vector<8x512xf32> -> vector<8x512xf32>
    %19 = arith.addf %15, %18 : vector<8x512xf32>
    %20 = vector.extract_strided_slice %19 {offsets = [0, 0], sizes = [8, 384], strides = [1, 1]} : vector<8x512xf32> to vector<8x384xf32>
    %21 = arith.negf %20 : vector<8x384xf32>
    %22 = math.exp %21 : vector<8x384xf32>
    %cst_17 = arith.constant 1.000000e+00 : f32
    %23 = vector.broadcast %cst_17 : f32 to vector<8x384xf32>
    %24 = arith.addf %23, %22 : vector<8x384xf32>
    %25 = arith.divf %23, %24 : vector<8x384xf32>
    %26 = vector.extract_strided_slice %19 {offsets = [0, 384], sizes = [8, 128], strides = [1, 1]} : vector<8x512xf32> to vector<8x128xf32>
    %27 = math.tanh %26 : vector<8x128xf32>
    %28 = vector.extract_strided_slice %25 {offsets = [0, 0], sizes = [8, 128], strides = [1, 1]} : vector<8x384xf32> to vector<8x128xf32>
    %29 = vector.extract_strided_slice %25 {offsets = [0, 128], sizes = [8, 128], strides = [1, 1]} : vector<8x384xf32> to vector<8x128xf32>
    %30 = vector.extract_strided_slice %25 {offsets = [0, 256], sizes = [8, 128], strides = [1, 1]} : vector<8x384xf32> to vector<8x128xf32>
    %31 = arith.mulf %29, %11 : vector<8x128xf32>
    %32 = arith.mulf %28, %27 : vector<8x128xf32>
    %33 = arith.addf %31, %32 : vector<8x128xf32>
    %34 = math.tanh %33 : vector<8x128xf32>
    %35 = arith.mulf %30, %34 : vector<8x128xf32>
    %c1_i32 = arith.constant 1 : i32
    %c8_i32_18 = arith.constant 8 : i32
    %36 = arith.muli %c1_i32, %c8_i32_18 : i32
    %37 = tpu.assume_multiple %36, 8 : i32
    %38 = arith.index_cast %37 : i32 to index
    %c0_19 = arith.constant 0 : index
    %39 = vector.load %arg13[%38, %c0_19] : memref<64x512xf32, #tpu.memory_space<vmem>>, vector<8x512xf32>
    %40 = arith.truncf %35 : vector<8x128xf32> to vector<8x128xbf16>
    %c0_20 = arith.constant 0 : index
    %c0_21 = arith.constant 0 : index
    %41 = vector.load %arg6[%c0_20, %c0_21] : memref<128x512xbf16, #tpu.memory_space<vmem>>, vector<128x512xbf16>
    %cst_22 = arith.constant dense<0.000000e+00> : vector<8x512xf32>
    %42 = tpu.matmul %40, %41, %cst_22 {dimension_numbers = #tpu.dot_dimension_numbers<[1], [0], [0], [1], [0, 0, 1, 1], [], []>} : vector<8x128xbf16>, vector<128x512xbf16>, vector<8x512xf32> -> vector<8x512xf32>
    %43 = arith.addf %39, %42 : vector<8x512xf32>
    %44 = vector.extract_strided_slice %43 {offsets = [0, 0], sizes = [8, 384], strides = [1, 1]} : vector<8x512xf32> to vector<8x384xf32>
    %45 = arith.negf %44 : vector<8x384xf32>
    %46 = math.exp %45 : vector<8x384xf32>
    %cst_23 = arith.constant 1.000000e+00 : f32
    %47 = vector.broadcast %cst_23 : f32 to vector<8x384xf32>
    %48 = arith.addf %47, %46 : vector<8x384xf32>
    %49 = arith.divf %47, %48 : vector<8x384xf32>
    %50 = vector.extract_strided_slice %43 {offsets = [0, 384], sizes = [8, 128], strides = [1, 1]} : vector<8x512xf32> to vector<8x128xf32>
    %51 = math.tanh %50 : vector<8x128xf32>
    %52 = vector.extract_strided_slice %49 {offsets = [0, 0], sizes = [8, 128], strides = [1, 1]} : vector<8x384xf32> to vector<8x128xf32>
    %53 = vector.extract_strided_slice %49 {offsets = [0, 128], sizes = [8, 128], strides = [1, 1]} : vector<8x384xf32> to vector<8x128xf32>
    %54 = vector.extract_strided_slice %49 {offsets = [0, 256], sizes = [8, 128], strides = [1, 1]} : vector<8x384xf32> to vector<8x128xf32>
    %55 = arith.mulf %53, %33 : vector<8x128xf32>
    %56 = arith.mulf %52, %51 : vector<8x128xf32>
    %57 = arith.addf %55, %56 : vector<8x128xf32>
    %58 = math.tanh %57 : vector<8x128xf32>
    %59 = arith.mulf %54, %58 : vector<8x128xf32>
    %c2_i32 = arith.constant 2 : i32
    %c8_i32_24 = arith.constant 8 : i32
    %60 = arith.muli %c2_i32, %c8_i32_24 : i32
    %61 = tpu.assume_multiple %60, 8 : i32
    %62 = arith.index_cast %61 : i32 to index
    %c0_25 = arith.constant 0 : index
    %63 = vector.load %arg13[%62, %c0_25] : memref<64x512xf32, #tpu.memory_space<vmem>>, vector<8x512xf32>
    %64 = arith.truncf %59 : vector<8x128xf32> to vector<8x128xbf16>
    %c0_26 = arith.constant 0 : index
    %c0_27 = arith.constant 0 : index
    %65 = vector.load %arg6[%c0_26, %c0_27] : memref<128x512xbf16, #tpu.memory_space<vmem>>, vector<128x512xbf16>
    %cst_28 = arith.constant dense<0.000000e+00> : vector<8x512xf32>
    %66 = tpu.matmul %64, %65, %cst_28 {dimension_numbers = #tpu.dot_dimension_numbers<[1], [0], [0], [1], [0, 0, 1, 1], [], []>} : vector<8x128xbf16>, vector<128x512xbf16>, vector<8x512xf32> -> vector<8x512xf32>
    %67 = arith.addf %63, %66 : vector<8x512xf32>
    %68 = vector.extract_strided_slice %67 {offsets = [0, 0], sizes = [8, 384], strides = [1, 1]} : vector<8x512xf32> to vector<8x384xf32>
    %69 = arith.negf %68 : vector<8x384xf32>
    %70 = math.exp %69 : vector<8x384xf32>
    %cst_29 = arith.constant 1.000000e+00 : f32
    %71 = vector.broadcast %cst_29 : f32 to vector<8x384xf32>
    %72 = arith.addf %71, %70 : vector<8x384xf32>
    %73 = arith.divf %71, %72 : vector<8x384xf32>
    %74 = vector.extract_strided_slice %67 {offsets = [0, 384], sizes = [8, 128], strides = [1, 1]} : vector<8x512xf32> to vector<8x128xf32>
    %75 = math.tanh %74 : vector<8x128xf32>
    %76 = vector.extract_strided_slice %73 {offsets = [0, 0], sizes = [8, 128], strides = [1, 1]} : vector<8x384xf32> to vector<8x128xf32>
    %77 = vector.extract_strided_slice %73 {offsets = [0, 128], sizes = [8, 128], strides = [1, 1]} : vector<8x384xf32> to vector<8x128xf32>
    %78 = vector.extract_strided_slice %73 {offsets = [0, 256], sizes = [8, 128], strides = [1, 1]} : vector<8x384xf32> to vector<8x128xf32>
    %79 = arith.mulf %77, %57 : vector<8x128xf32>
    %80 = arith.mulf %76, %75 : vector<8x128xf32>
    %81 = arith.addf %79, %80 : vector<8x128xf32>
    %82 = math.tanh %81 : vector<8x128xf32>
    %83 = arith.mulf %78, %82 : vector<8x128xf32>
    %c3_i32 = arith.constant 3 : i32
    %c8_i32_30 = arith.constant 8 : i32
    %84 = arith.muli %c3_i32, %c8_i32_30 : i32
    %85 = tpu.assume_multiple %84, 8 : i32
    %86 = arith.index_cast %85 : i32 to index
    %c0_31 = arith.constant 0 : index
    %87 = vector.load %arg13[%86, %c0_31] : memref<64x512xf32, #tpu.memory_space<vmem>>, vector<8x512xf32>
    %88 = arith.truncf %83 : vector<8x128xf32> to vector<8x128xbf16>
    %c0_32 = arith.constant 0 : index
    %c0_33 = arith.constant 0 : index
    %89 = vector.load %arg6[%c0_32, %c0_33] : memref<128x512xbf16, #tpu.memory_space<vmem>>, vector<128x512xbf16>
    %cst_34 = arith.constant dense<0.000000e+00> : vector<8x512xf32>
    %90 = tpu.matmul %88, %89, %cst_34 {dimension_numbers = #tpu.dot_dimension_numbers<[1], [0], [0], [1], [0, 0, 1, 1], [], []>} : vector<8x128xbf16>, vector<128x512xbf16>, vector<8x512xf32> -> vector<8x512xf32>
    %91 = arith.addf %87, %90 : vector<8x512xf32>
    %92 = vector.extract_strided_slice %91 {offsets = [0, 0], sizes = [8, 384], strides = [1, 1]} : vector<8x512xf32> to vector<8x384xf32>
    %93 = arith.negf %92 : vector<8x384xf32>
    %94 = math.exp %93 : vector<8x384xf32>
    %cst_35 = arith.constant 1.000000e+00 : f32
    %95 = vector.broadcast %cst_35 : f32 to vector<8x384xf32>
    %96 = arith.addf %95, %94 : vector<8x384xf32>
    %97 = arith.divf %95, %96 : vector<8x384xf32>
    %98 = vector.extract_strided_slice %91 {offsets = [0, 384], sizes = [8, 128], strides = [1, 1]} : vector<8x512xf32> to vector<8x128xf32>
    %99 = math.tanh %98 : vector<8x128xf32>
    %100 = vector.extract_strided_slice %97 {offsets = [0, 0], sizes = [8, 128], strides = [1, 1]} : vector<8x384xf32> to vector<8x128xf32>
    %101 = vector.extract_strided_slice %97 {offsets = [0, 128], sizes = [8, 128], strides = [1, 1]} : vector<8x384xf32> to vector<8x128xf32>
    %102 = vector.extract_strided_slice %97 {offsets = [0, 256], sizes = [8, 128], strides = [1, 1]} : vector<8x384xf32> to vector<8x128xf32>
    %103 = arith.mulf %101, %81 : vector<8x128xf32>
    %104 = arith.mulf %100, %99 : vector<8x128xf32>
    %105 = arith.addf %103, %104 : vector<8x128xf32>
    %106 = math.tanh %105 : vector<8x128xf32>
    %107 = arith.mulf %102, %106 : vector<8x128xf32>
    %c4_i32 = arith.constant 4 : i32
    %c8_i32_36 = arith.constant 8 : i32
    %108 = arith.muli %c4_i32, %c8_i32_36 : i32
    %109 = tpu.assume_multiple %108, 8 : i32
    %110 = arith.index_cast %109 : i32 to index
    %c0_37 = arith.constant 0 : index
    %111 = vector.load %arg13[%110, %c0_37] : memref<64x512xf32, #tpu.memory_space<vmem>>, vector<8x512xf32>
    %112 = arith.truncf %107 : vector<8x128xf32> to vector<8x128xbf16>
    %c0_38 = arith.constant 0 : index
    %c0_39 = arith.constant 0 : index
    %113 = vector.load %arg6[%c0_38, %c0_39] : memref<128x512xbf16, #tpu.memory_space<vmem>>, vector<128x512xbf16>
    %cst_40 = arith.constant dense<0.000000e+00> : vector<8x512xf32>
    %114 = tpu.matmul %112, %113, %cst_40 {dimension_numbers = #tpu.dot_dimension_numbers<[1], [0], [0], [1], [0, 0, 1, 1], [], []>} : vector<8x128xbf16>, vector<128x512xbf16>, vector<8x512xf32> -> vector<8x512xf32>
    %115 = arith.addf %111, %114 : vector<8x512xf32>
    %116 = vector.extract_strided_slice %115 {offsets = [0, 0], sizes = [8, 384], strides = [1, 1]} : vector<8x512xf32> to vector<8x384xf32>
    %117 = arith.negf %116 : vector<8x384xf32>
    %118 = math.exp %117 : vector<8x384xf32>
    %cst_41 = arith.constant 1.000000e+00 : f32
    %119 = vector.broadcast %cst_41 : f32 to vector<8x384xf32>
    %120 = arith.addf %119, %118 : vector<8x384xf32>
    %121 = arith.divf %119, %120 : vector<8x384xf32>
    %122 = vector.extract_strided_slice %115 {offsets = [0, 384], sizes = [8, 128], strides = [1, 1]} : vector<8x512xf32> to vector<8x128xf32>
    %123 = math.tanh %122 : vector<8x128xf32>
    %124 = vector.extract_strided_slice %121 {offsets = [0, 0], sizes = [8, 128], strides = [1, 1]} : vector<8x384xf32> to vector<8x128xf32>
    %125 = vector.extract_strided_slice %121 {offsets = [0, 128], sizes = [8, 128], strides = [1, 1]} : vector<8x384xf32> to vector<8x128xf32>
    %126 = vector.extract_strided_slice %121 {offsets = [0, 256], sizes = [8, 128], strides = [1, 1]} : vector<8x384xf32> to vector<8x128xf32>
    %127 = arith.mulf %125, %105 : vector<8x128xf32>
    %128 = arith.mulf %124, %123 : vector<8x128xf32>
    %129 = arith.addf %127, %128 : vector<8x128xf32>
    %130 = math.tanh %129 : vector<8x128xf32>
    %131 = arith.mulf %126, %130 : vector<8x128xf32>
    %c5_i32 = arith.constant 5 : i32
    %c8_i32_42 = arith.constant 8 : i32
    %132 = arith.muli %c5_i32, %c8_i32_42 : i32
    %133 = tpu.assume_multiple %132, 8 : i32
    %134 = arith.index_cast %133 : i32 to index
    %c0_43 = arith.constant 0 : index
    %135 = vector.load %arg13[%134, %c0_43] : memref<64x512xf32, #tpu.memory_space<vmem>>, vector<8x512xf32>
    %136 = arith.truncf %131 : vector<8x128xf32> to vector<8x128xbf16>
    %c0_44 = arith.constant 0 : index
    %c0_45 = arith.constant 0 : index
    %137 = vector.load %arg6[%c0_44, %c0_45] : memref<128x512xbf16, #tpu.memory_space<vmem>>, vector<128x512xbf16>
    %cst_46 = arith.constant dense<0.000000e+00> : vector<8x512xf32>
    %138 = tpu.matmul %136, %137, %cst_46 {dimension_numbers = #tpu.dot_dimension_numbers<[1], [0], [0], [1], [0, 0, 1, 1], [], []>} : vector<8x128xbf16>, vector<128x512xbf16>, vector<8x512xf32> -> vector<8x512xf32>
    %139 = arith.addf %135, %138 : vector<8x512xf32>
    %140 = vector.extract_strided_slice %139 {offsets = [0, 0], sizes = [8, 384], strides = [1, 1]} : vector<8x512xf32> to vector<8x384xf32>
    %141 = arith.negf %140 : vector<8x384xf32>
    %142 = math.exp %141 : vector<8x384xf32>
    %cst_47 = arith.constant 1.000000e+00 : f32
    %143 = vector.broadcast %cst_47 : f32 to vector<8x384xf32>
    %144 = arith.addf %143, %142 : vector<8x384xf32>
    %145 = arith.divf %143, %144 : vector<8x384xf32>
    %146 = vector.extract_strided_slice %139 {offsets = [0, 384], sizes = [8, 128], strides = [1, 1]} : vector<8x512xf32> to vector<8x128xf32>
    %147 = math.tanh %146 : vector<8x128xf32>
    %148 = vector.extract_strided_slice %145 {offsets = [0, 0], sizes = [8, 128], strides = [1, 1]} : vector<8x384xf32> to vector<8x128xf32>
    %149 = vector.extract_strided_slice %145 {offsets = [0, 128], sizes = [8, 128], strides = [1, 1]} : vector<8x384xf32> to vector<8x128xf32>
    %150 = vector.extract_strided_slice %145 {offsets = [0, 256], sizes = [8, 128], strides = [1, 1]} : vector<8x384xf32> to vector<8x128xf32>
    %151 = arith.mulf %149, %129 : vector<8x128xf32>
    %152 = arith.mulf %148, %147 : vector<8x128xf32>
    %153 = arith.addf %151, %152 : vector<8x128xf32>
    %154 = math.tanh %153 : vector<8x128xf32>
    %155 = arith.mulf %150, %154 : vector<8x128xf32>
    %c6_i32 = arith.constant 6 : i32
    %c8_i32_48 = arith.constant 8 : i32
    %156 = arith.muli %c6_i32, %c8_i32_48 : i32
    %157 = tpu.assume_multiple %156, 8 : i32
    %158 = arith.index_cast %157 : i32 to index
    %c0_49 = arith.constant 0 : index
    %159 = vector.load %arg13[%158, %c0_49] : memref<64x512xf32, #tpu.memory_space<vmem>>, vector<8x512xf32>
    %160 = arith.truncf %155 : vector<8x128xf32> to vector<8x128xbf16>
    %c0_50 = arith.constant 0 : index
    %c0_51 = arith.constant 0 : index
    %161 = vector.load %arg6[%c0_50, %c0_51] : memref<128x512xbf16, #tpu.memory_space<vmem>>, vector<128x512xbf16>
    %cst_52 = arith.constant dense<0.000000e+00> : vector<8x512xf32>
    %162 = tpu.matmul %160, %161, %cst_52 {dimension_numbers = #tpu.dot_dimension_numbers<[1], [0], [0], [1], [0, 0, 1, 1], [], []>} : vector<8x128xbf16>, vector<128x512xbf16>, vector<8x512xf32> -> vector<8x512xf32>
    %163 = arith.addf %159, %162 : vector<8x512xf32>
    %164 = vector.extract_strided_slice %163 {offsets = [0, 0], sizes = [8, 384], strides = [1, 1]} : vector<8x512xf32> to vector<8x384xf32>
    %165 = arith.negf %164 : vector<8x384xf32>
    %166 = math.exp %165 : vector<8x384xf32>
    %cst_53 = arith.constant 1.000000e+00 : f32
    %167 = vector.broadcast %cst_53 : f32 to vector<8x384xf32>
    %168 = arith.addf %167, %166 : vector<8x384xf32>
    %169 = arith.divf %167, %168 : vector<8x384xf32>
    %170 = vector.extract_strided_slice %163 {offsets = [0, 384], sizes = [8, 128], strides = [1, 1]} : vector<8x512xf32> to vector<8x128xf32>
    %171 = math.tanh %170 : vector<8x128xf32>
    %172 = vector.extract_strided_slice %169 {offsets = [0, 0], sizes = [8, 128], strides = [1, 1]} : vector<8x384xf32> to vector<8x128xf32>
    %173 = vector.extract_strided_slice %169 {offsets = [0, 128], sizes = [8, 128], strides = [1, 1]} : vector<8x384xf32> to vector<8x128xf32>
    %174 = vector.extract_strided_slice %169 {offsets = [0, 256], sizes = [8, 128], strides = [1, 1]} : vector<8x384xf32> to vector<8x128xf32>
    %175 = arith.mulf %173, %153 : vector<8x128xf32>
    %176 = arith.mulf %172, %171 : vector<8x128xf32>
    %177 = arith.addf %175, %176 : vector<8x128xf32>
    %178 = math.tanh %177 : vector<8x128xf32>
    %179 = arith.mulf %174, %178 : vector<8x128xf32>
    %c7_i32 = arith.constant 7 : i32
    %c8_i32_54 = arith.constant 8 : i32
    %180 = arith.muli %c7_i32, %c8_i32_54 : i32
    %181 = tpu.assume_multiple %180, 8 : i32
    %182 = arith.index_cast %181 : i32 to index
    %c0_55 = arith.constant 0 : index
    %183 = vector.load %arg13[%182, %c0_55] : memref<64x512xf32, #tpu.memory_space<vmem>>, vector<8x512xf32>
    %184 = arith.truncf %179 : vector<8x128xf32> to vector<8x128xbf16>
    %c0_56 = arith.constant 0 : index
    %c0_57 = arith.constant 0 : index
    %185 = vector.load %arg6[%c0_56, %c0_57] : memref<128x512xbf16, #tpu.memory_space<vmem>>, vector<128x512xbf16>
    %cst_58 = arith.constant dense<0.000000e+00> : vector<8x512xf32>
    %186 = tpu.matmul %184, %185, %cst_58 {dimension_numbers = #tpu.dot_dimension_numbers<[1], [0], [0], [1], [0, 0, 1, 1], [], []>} : vector<8x128xbf16>, vector<128x512xbf16>, vector<8x512xf32> -> vector<8x512xf32>
    %187 = arith.addf %183, %186 : vector<8x512xf32>
    %188 = vector.extract_strided_slice %187 {offsets = [0, 0], sizes = [8, 384], strides = [1, 1]} : vector<8x512xf32> to vector<8x384xf32>
    %189 = arith.negf %188 : vector<8x384xf32>
    %190 = math.exp %189 : vector<8x384xf32>
    %cst_59 = arith.constant 1.000000e+00 : f32
    %191 = vector.broadcast %cst_59 : f32 to vector<8x384xf32>
    %192 = arith.addf %191, %190 : vector<8x384xf32>
    %193 = arith.divf %191, %192 : vector<8x384xf32>
    %194 = vector.extract_strided_slice %187 {offsets = [0, 384], sizes = [8, 128], strides = [1, 1]} : vector<8x512xf32> to vector<8x128xf32>
    %195 = math.tanh %194 : vector<8x128xf32>
    %196 = vector.extract_strided_slice %193 {offsets = [0, 0], sizes = [8, 128], strides = [1, 1]} : vector<8x384xf32> to vector<8x128xf32>
    %197 = vector.extract_strided_slice %193 {offsets = [0, 128], sizes = [8, 128], strides = [1, 1]} : vector<8x384xf32> to vector<8x128xf32>
    %198 = vector.extract_strided_slice %193 {offsets = [0, 256], sizes = [8, 128], strides = [1, 1]} : vector<8x384xf32> to vector<8x128xf32>
    %199 = arith.mulf %197, %177 : vector<8x128xf32>
    %200 = arith.mulf %196, %195 : vector<8x128xf32>
    %201 = arith.addf %199, %200 : vector<8x128xf32>
    %202 = math.tanh %201 : vector<8x128xf32>
    %203 = arith.mulf %198, %202 : vector<8x128xf32>
    %c8_i32_60 = arith.constant 8 : i32
    %c0_61 = arith.constant 0 : index
    %c0_62 = arith.constant 0 : index
    %204 = vector.load %arg11[%c0_61, %c0_62] : memref<8x128xf32, #tpu.memory_space<vmem>>, vector<8x128xf32>
    tpu.vector_store %arg11[%c0_61, %c0_62], %203 {strides = array<i32>} : memref<8x128xf32, #tpu.memory_space<vmem>>, vector<8x128xf32>,
    %c0_63 = arith.constant 0 : index
    %c0_64 = arith.constant 0 : index
    %205 = vector.load %arg12[%c0_63, %c0_64] : memref<8x128xf32, #tpu.memory_space<vmem>>, vector<8x128xf32>
    tpu.vector_store %arg12[%c0_63, %c0_64], %201 {strides = array<i32>} : memref<8x128xf32, #tpu.memory_space<vmem>>, vector<8x128xf32>,
    %c0_i32_65 = arith.constant 0 : i32
    %206 = arith.cmpi eq, %arg1, %c0_i32_65 : i32
    %207 = arith.extui %206 : i1 to i32
    %c0_i32_66 = arith.constant 0 : i32
    %208 = arith.cmpi ne, %207, %c0_i32_66 : i32
    scf.if %208 {
      %c0_67 = arith.constant 0 : index
      %c0_68 = arith.constant 0 : index
      %209 = vector.load %arg11[%c0_67, %c0_68] : memref<8x128xf32, #tpu.memory_space<vmem>>, vector<8x128xf32>
      %210 = arith.truncf %209 : vector<8x128xf32> to vector<8x128xbf16>
      %c0_69 = arith.constant 0 : index
      %c0_70 = arith.constant 0 : index
      %211 = vector.load %arg8[%c0_69, %c0_70] : memref<128x128xbf16, #tpu.memory_space<vmem>>, vector<128x128xbf16>
      %cst_71 = arith.constant dense<0.000000e+00> : vector<8x128xf32>
      %212 = tpu.matmul %210, %211, %cst_71 {dimension_numbers = #tpu.dot_dimension_numbers<[1], [0], [0], [1], [0, 0, 1, 1], [], []>} : vector<8x128xbf16>, vector<128x128xbf16>, vector<8x128xf32> -> vector<8x128xf32>
      %c0_72 = arith.constant 0 : index
      %c0_73 = arith.constant 0 : index
      %213 = vector.load %arg9[%c0_72, %c0_73] : memref<1x128xf32, #tpu.memory_space<vmem>>, vector<1x128xf32>
      %214 = vector.broadcast %213 : vector<1x128xf32> to vector<8x128xf32>
      %215 = arith.addf %212, %214 : vector<8x128xf32>
      %c0_74 = arith.constant 0 : index
      %c0_75 = arith.constant 0 : index
      %216 = vector.load %arg10[%c0_74, %c0_75] : memref<8x128xf32, #tpu.memory_space<vmem>>, vector<8x128xf32>
      tpu.vector_store %arg10[%c0_74, %c0_75], %215 {strides = array<i32>} : memref<8x128xf32, #tpu.memory_space<vmem>>, vector<8x128xf32>,
    } else {
    }
    return
  }
  func.func @transform_0(%arg0: i32, %arg1: i32) -> (i32, i32) {
    %c1_i32 = arith.constant 1 : i32
    %0 = arith.muli %arg0, %c1_i32 : i32
    %1 = arith.addi %0, %arg1 : i32
    %c0_i32 = arith.constant 0 : i32
    %c0_i32_0 = arith.constant 0 : i32
    return %1, %c0_i32 : i32, i32
  }
  func.func @transform_1(%arg0: i32, %arg1: i32) -> (i32, i32) {
    %c0_i32 = arith.constant 0 : i32
    %c0_i32_0 = arith.constant 0 : i32
    return %arg0, %c0_i32 : i32, i32
  }
  func.func @transform_2(%arg0: i32, %arg1: i32) -> (i32, i32) {
    %c0_i32 = arith.constant 0 : i32
    %c0_i32_0 = arith.constant 0 : i32
    return %arg0, %c0_i32 : i32, i32
  }
  func.func @transform_3(%arg0: i32, %arg1: i32) -> (i32, i32) {
    %c0_i32 = arith.constant 0 : i32
    %c0_i32_0 = arith.constant 0 : i32
    %c0_i32_1 = arith.constant 0 : i32
    return %c0_i32, %c0_i32_0 : i32, i32
  }
  func.func @transform_4(%arg0: i32, %arg1: i32) -> (i32, i32) {
    %c0_i32 = arith.constant 0 : i32
    %c0_i32_0 = arith.constant 0 : i32
    %c0_i32_1 = arith.constant 0 : i32
    return %c0_i32, %c0_i32_0 : i32, i32
  }
  func.func @transform_5(%arg0: i32, %arg1: i32) -> (i32, i32) {
    %c0_i32 = arith.constant 0 : i32
    %c0_i32_0 = arith.constant 0 : i32
    %c0_i32_1 = arith.constant 0 : i32
    return %c0_i32, %c0_i32_0 : i32, i32
  }
  func.func @transform_6(%arg0: i32, %arg1: i32) -> (i32, i32) {
    %c0_i32 = arith.constant 0 : i32
    %c0_i32_0 = arith.constant 0 : i32
    %c0_i32_1 = arith.constant 0 : i32
    return %c0_i32, %c0_i32_0 : i32, i32
  }
  func.func @transform_7(%arg0: i32, %arg1: i32) -> (i32, i32) {
    %c0_i32 = arith.constant 0 : i32
    %c0_i32_0 = arith.constant 0 : i32
    %c0_i32_1 = arith.constant 0 : i32
    return %c0_i32, %c0_i32_0 : i32, i32
  }
  func.func @transform_8(%arg0: i32, %arg1: i32) -> (i32, i32) {
    %c0_i32 = arith.constant 0 : i32
    %c0_i32_0 = arith.constant 0 : i32
    return %arg0, %c0_i32 : i32, i32
  }
}

</mosaic_0001>

<bundles_post_ra>
// kernel: tpu_custom_call.1
= control target key start
LH: loop header
LB: loop body
LE: loop exit
PB: predicated region body
PF: predicated region fallthrough
CT: control target
= control target key end

     0   :  { %13 = vsyncpa [#allocation6], 0  ;;  %s3092_s0 = inlined_call_operand.hbm [shape: bf16[64,128], index: 0, kind: input, shape index: {}]   ;;  %s3093_s1 = inlined_call_operand.hbm [shape: f32[8,128], index: 1, kind: input, shape index: {}]   ;;  %s3094_s2 = inlined_call_operand.hbm [shape: f32[8,128], index: 2, kind: input, shape index: {}]   ;;  %s3095_s3 = inlined_call_operand.hbm [shape: bf16[128,512], index: 3, kind: input, shape index: {}]   ;;  %s3096_s4 = inlined_call_operand.hbm [shape: bf16[128,512], index: 4, kind: input, shape index: {}]   ;;  %s3097_s5 = inlined_call_operand.vmem [shape: f32[1,512], index: 5, kind: input, shape index: {}]   ;;  %s3098_s6 = inlined_call_operand.hbm [shape: bf16[128,128], index: 6, kind: input, shape index: {}]   ;;  %s3099_s7 = inlined_call_operand.vmem [shape: f32[1,128], index: 7, kind: input, shape index: {}]   ;;  %s3100_s8 = inlined_call_operand.hbm [shape: f32[8,128], index: 8, kind: output, shape index: {}]  }
   0x1   :  { %14 = vsyncpa [#allocation9], 0 }
   0x2   :  { %15 = vsyncpa [#allocation12], 0 }
   0x3   :  { %16 = vsyncpa [#allocation15], 0 }
   0x4   :  { %17 = vsyncpa [#allocation7], 0  ;;  %s2405_s27 = smov [#allocation8]   ;;  %s2406_s29 = smov [#allocation11]  }
   0x5   :  { %s40_s28 = sshll.u32 %s2405_s27, 4  ;;  %s59_s30 = sshll.u32 %s2406_s29, 4  ;;  %s41_s28 = int_to_ptr.vmem [resolvable:$true] %s40_s28  ;;  %s2464_s30 = int_to_ptr.vmem [resolvable:$true] %s59_s30 }
   0x6   :  { %s2241_s11 = scalar_lea.hbm %s3093_s1, 128 }
   0x7   :  { %p2242_p0 = scmp.ne.s32.totalorder %s3093_s1, %s2241_s11  ;;  %p2245_p1 = scmp.lt.u32.totalorder %s2241_s11, %s3093_s1 }
   0x9   :  { %p2247_p2 = pnand %p2245_p1, %p2242_p0 }
   0xb   :  { %2250 = shalt.err (!%p2247_p2)
}
   0xc   :  { %s2251_s16 = scalar_lea.vmem %s41_s28, 128  ;;  %p2256_p4 = scmp.lt.s32.totalorder %s41_s28, %s41_s28 }
   0xd   :  { %p2252_p3 = scmp.ne.s32.totalorder %s41_s28, %s2251_s16  ;;  %p2257_p5 = scmp.lt.s32.totalorder %s2251_s16, %s2251_s16 }
   0xf   :  { %p2258_p6 = por %p2257_p5, %p2256_p4 }
  0x11   :  { %p2259_p7 = pnand %p2258_p6, %p2252_p3 }
  0x13   :  { %2262 = shalt.err (!%p2259_p7)
}
  0x14   :  { %43 = dma.hbm_to_vmem [thread:$0]  %s3093_s1, 128, %s41_s28, [#allocation9]  }
  0x15   :  { %s2263_s21 = scalar_lea.hbm %s3095_s3, 4096 }
  0x16   :  { %p2264_p8 = scmp.ne.s32.totalorder %s3095_s3, %s2263_s21  ;;  %p2267_p9 = scmp.lt.u32.totalorder %s2263_s21, %s3095_s3 }
  0x18   :  { %p2269_p10 = pnand %p2267_p9, %p2264_p8 }
  0x1a   :  { %2272 = shalt.err (!%p2269_p10)
}
  0x1b   :  { %s2273_s26 = scalar_lea.vmem %s2464_s30, 4096  ;;  %p2278_p12 = scmp.lt.s32.totalorder %s2464_s30, %s2464_s30 }
  0x1c   :  { %p2274_p11 = scmp.ne.s32.totalorder %s2464_s30, %s2273_s26  ;;  %p2279_p13 = scmp.lt.s32.totalorder %s2273_s26, %s2273_s26 }
  0x1e   :  { %p2280_p0 = por %p2279_p13, %p2278_p12 }
  0x20   :  { %p2281_p1 = pnand %p2280_p0, %p2274_p11 }
  0x22   :  { %2284 = shalt.err (!%p2281_p1)
}
  0x23   :  { %s2407_s1 = smov 256   ;;  %s2408_s27 = smov 16  }
  0x24   :  { %65 = dma.hbm_to_vmem [thread:$0]  %s3095_s3, 4096, %s2464_s30, [#allocation12], %s2407_s1, %s2407_s1, %s2408_s27  }
  0x25   :  { %s2409_s9 = smov [#allocation5]   ;;  %s2285_s13 = scalar_lea.hbm %s3092_s0, 512 }
  0x26   :  { %s27_s10 = sshll.u32 %s2409_s9, 4  ;;  %p2286_p2 = scmp.ne.s32.totalorder %s3092_s0, %s2285_s13  ;;  %s28_s10 = int_to_ptr.vmem [resolvable:$true] %s27_s10 }
  0x27   :  { %p2289_p3 = scmp.lt.u32.totalorder %s2285_s13, %s3092_s0 }
  0x29   :  { %p2291_p4 = pnand %p2289_p3, %p2286_p2 }
  0x2b   :  { %2294 = shalt.err (!%p2291_p4)
}
  0x2c   :  { %s2295_s18 = scalar_lea.vmem %s28_s10, 512  ;;  %p2300_p6 = scmp.lt.s32.totalorder %s28_s10, %s28_s10 }
  0x2d   :  { %p2296_p5 = scmp.ne.s32.totalorder %s28_s10, %s2295_s18  ;;  %p2301_p7 = scmp.lt.s32.totalorder %s2295_s18, %s2295_s18 }
  0x2f   :  { %p2302_p8 = por %p2301_p7, %p2300_p6 }
  0x31   :  { %p2303_p9 = pnand %p2302_p8, %p2296_p5 }
  0x33   :  { %2306 = shalt.err (!%p2303_p9)
}
  0x34   :  { %s2410_s3 = smov 64   ;;  %s2411_s30 = smov 4  }
  0x35   :  { %33 = dma.hbm_to_vmem [thread:$0]  %s3092_s0, 512, %s28_s10, [#allocation6], %s2410_s3, %s2410_s3, %s2411_s30  }
  0x36   :  { %s2412_s21 = smov [#allocation10]   ;;  %s2413_s23 = smov [#allocation13]  }
  0x37   :  { %s50_s22 = sshll.u32 %s2412_s21, 4  ;;  %s71_s24 = sshll.u32 %s2413_s23, 4  ;;  %s51_s22 = int_to_ptr.vmem [resolvable:$true] %s50_s22  ;;  %s72_s24 = int_to_ptr.vmem [resolvable:$true] %s71_s24 }
  0x38   :  { %s2307_s28 = scalar_lea.hbm %s3094_s2, 128 }
  0x39   :  { %p2308_p10 = scmp.ne.s32.totalorder %s3094_s2, %s2307_s28  ;;  %p2311_p11 = scmp.lt.u32.totalorder %s2307_s28, %s3094_s2 }
  0x3b   :  { %p2313_p12 = pnand %p2311_p11, %p2308_p10 }
  0x3d   :  { %2316 = shalt.err (!%p2313_p12)
}
  0x3e   :  { %s2317_s0 = scalar_lea.vmem %s51_s22, 128  ;;  %p2322_p0 = scmp.lt.s32.totalorder %s51_s22, %s51_s22 }
  0x3f   :  { %p2318_p13 = scmp.ne.s32.totalorder %s51_s22, %s2317_s0  ;;  %p2323_p1 = scmp.lt.s32.totalorder %s2317_s0, %s2317_s0 }
  0x41   :  { %p2324_p2 = por %p2323_p1, %p2322_p0 }
  0x43   :  { %p2325_p3 = pnand %p2324_p2, %p2318_p13 }
  0x45   :  { %2328 = shalt.err (!%p2325_p3)
}
  0x46   :  { %53 = dma.hbm_to_vmem [thread:$0]  %s3094_s2, 128, %s51_s22, [#allocation9]  }
  0x47   :  { %s2329_s16 = scalar_lea.hbm %s3096_s4, 4096 }
  0x48   :  { %p2330_p4 = scmp.ne.s32.totalorder %s3096_s4, %s2329_s16  ;;  %p2333_p5 = scmp.lt.u32.totalorder %s2329_s16, %s3096_s4 }
  0x4a   :  { %p2335_p6 = pnand %p2333_p5, %p2330_p4 }
  0x4c   :  { %2338 = shalt.err (!%p2335_p6)
}
  0x4d   :  { %s2339_s21 = scalar_lea.vmem %s72_s24, 4096  ;;  %p2344_p8 = scmp.lt.s32.totalorder %s72_s24, %s72_s24 }
  0x4e   :  { %p2340_p7 = scmp.ne.s32.totalorder %s72_s24, %s2339_s21  ;;  %p2345_p9 = scmp.lt.s32.totalorder %s2339_s21, %s2339_s21 }
  0x50   :  { %p2346_p10 = por %p2345_p9, %p2344_p8 }
  0x52   :  { %p2347_p11 = pnand %p2346_p10, %p2340_p7 }
  0x54   :  { %2350 = shalt.err (!%p2347_p11)
}
  0x55   :  { %77 = dma.hbm_to_vmem [thread:$0]  %s3096_s4, 4096, %s72_s24, [#allocation12], %s2407_s1, %s2407_s1, %s2408_s27  }
  0x56   :  { %s2414_s23 = smov [#allocation14]   ;;  %s2351_s29 = scalar_lea.hbm %s3098_s6, 1024 }
  0x57   :  { %s85_s25 = sshll.u32 %s2414_s23, 4  ;;  %p2352_p12 = scmp.ne.s32.totalorder %s3098_s6, %s2351_s29  ;;  %s86_s25 = int_to_ptr.vmem [resolvable:$true] %s85_s25 }
  0x58   :  { %p2355_p13 = scmp.lt.u32.totalorder %s2351_s29, %s3098_s6 }
  0x5a   :  { %p2357_p0 = pnand %p2355_p13, %p2352_p12 }
  0x5c   :  { %2360 = shalt.err (!%p2357_p0)
}
  0x5d   :  { %s2361_s10 = scalar_lea.vmem %s86_s25, 1024  ;;  %p2366_p2 = scmp.lt.s32.totalorder %s86_s25, %s86_s25 }
  0x5e   :  { %p2362_p1 = scmp.ne.s32.totalorder %s86_s25, %s2361_s10  ;;  %p2367_p3 = scmp.lt.s32.totalorder %s2361_s10, %s2361_s10 }
  0x60   :  { %p2368_p4 = por %p2367_p3, %p2366_p2 }
  0x62   :  { %p2369_p5 = pnand %p2368_p4, %p2362_p1 }
  0x64   :  { %2372 = shalt.err (!%p2369_p5)
}
  0x65   :  { %91 = dma.hbm_to_vmem [thread:$0]  %s3098_s6, 1024, %s86_s25, [#allocation15], %s2410_s3, %s2410_s3, %s2411_s30  }
  0x66   :  { %2395 = dma.done.wait [#allocation6], 512  }
  0x67   :  { %2396 = vsyncadd [#allocation6], 4294966784 }
  0x68   :  { %2397 = dma.done.wait [#allocation9], 256  }
  0x69   :  { %2398 = vsyncadd [#allocation9], 4294967040 }
  0x6a   :  { %2399 = dma.done.wait [#allocation12], 8192  }
  0x6b   :  { %2400 = vsyncadd [#allocation12], 4294959104 }
  0x6c   :  { %2401 = dma.done.wait [#allocation15], 1024  }
  0x6d   :  { %2402 = vsyncadd [#allocation15], 4294966272  ;;  %v3101_v0 = vmov 0   ;;  %v1973_v1 = vld [vmem:[#allocation11 + $0x4] ss:$16 sps:$4 sm:$0xff]   ;;  %v2034_v44 = vld [vmem:[#allocation5 + $0x8] sm:$0xff]  }
  0x6e   :  { %401 = vmatprep.mubr.bf16.mxu0 %v3101_v0  ;;  %474 = vmatprep.mubr.bf16.mxu1 %v3101_v0  ;;  %v1975_v2 = vld [vmem:[#allocation11 + $0xc] ss:$16 sps:$4 sm:$0xff]   ;;  %v1977_v3 = vld [vmem:[#allocation11] ss:$16 sps:$4 sm:$0xff]   ;;  %v1978_v4 = vld [vmem:[#allocation11 + $0x8] ss:$16 sps:$4 sm:$0xff]  }
  0x6f   :  { %369 = vmatprep.subr.bf16.mxu0 %v1973_v1  ;;  %442 = vmatprep.subr.bf16.mxu1 %v1975_v2  ;;  %v1979_v5 = vld [vmem:[#allocation11 + $0x24] ss:$16 sps:$4 sm:$0xff]   ;;  %v1981_v6 = vld [vmem:[#allocation11 + $0x2c] ss:$16 sps:$4 sm:$0xff]   ;;  %v1983_v7 = vld [vmem:[#allocation11 + $0x20] ss:$16 sps:$4 sm:$0xff]  }
  0x70   :  { %370 = vmatpush1.bf16.msra.mxu0 %v1977_v3  ;;  %443 = vmatpush1.bf16.msra.mxu1 %v1978_v4  ;;  %v1984_v8 = vld [vmem:[#allocation11 + $0x28] ss:$16 sps:$4 sm:$0xff]   ;;  %v1985_v9 = vld [vmem:[#allocation11 + $0x44] ss:$16 sps:$4 sm:$0xff]   ;;  %v1987_v10 = vld [vmem:[#allocation11 + $0x4c] ss:$16 sps:$4 sm:$0xff]  }
  0x71   :  { %371 = vmatprep.subr.bf16.mxu0 %v1979_v5  ;;  %444 = vmatprep.subr.bf16.mxu1 %v1981_v6  ;;  %v1989_v11 = vld [vmem:[#allocation11 + $0x40] ss:$16 sps:$4 sm:$0xff]   ;;  %v1990_v12 = vld [vmem:[#allocation11 + $0x48] ss:$16 sps:$4 sm:$0xff]   ;;  %v1991_v13 = vld [vmem:[#allocation11 + $0x64] ss:$16 sps:$4 sm:$0xff]  }
  0x72   :  { %v1993_v14 = vld [vmem:[#allocation11 + $0x6c] ss:$16 sps:$4 sm:$0xff]   ;;  %v1995_v15 = vld [vmem:[#allocation11 + $0x60] ss:$16 sps:$4 sm:$0xff]   ;;  %v1996_v16 = vld [vmem:[#allocation11 + $0x68] ss:$16 sps:$4 sm:$0xff]  }
  0x73   :  { %v1997_v17 = vld [vmem:[#allocation11 + $0x84] ss:$16 sps:$4 sm:$0xff]   ;;  %v1999_v18 = vld [vmem:[#allocation11 + $0x8c] ss:$16 sps:$4 sm:$0xff]   ;;  %v2001_v19 = vld [vmem:[#allocation11 + $0x80] ss:$16 sps:$4 sm:$0xff]  }
  0x74   :  { %372 = vmatpush1.bf16.msra.mxu0 %v1983_v7  ;;  %445 = vmatpush1.bf16.msra.mxu1 %v1984_v8  ;;  %v2002_v20 = vld [vmem:[#allocation11 + $0x88] ss:$16 sps:$4 sm:$0xff]   ;;  %v2003_v21 = vld [vmem:[#allocation11 + $0xa4] ss:$16 sps:$4 sm:$0xff]   ;;  %v2005_v22 = vld [vmem:[#allocation11 + $0xac] ss:$16 sps:$4 sm:$0xff]   ;;  %v165_v8 = vlaneseq }
  0x75   :  { %373 = vmatprep.subr.bf16.mxu0 %v1985_v9  ;;  %446 = vmatprep.subr.bf16.mxu1 %v1987_v10  ;;  %v2007_v23 = vld [vmem:[#allocation11 + $0xa0] ss:$16 sps:$4 sm:$0xff]   ;;  %v2008_v24 = vld [vmem:[#allocation11 + $0xa8] ss:$16 sps:$4 sm:$0xff]   ;;  %v2009_v25 = vld [vmem:[#allocation11 + $0xc4] ss:$16 sps:$4 sm:$0xff]  }
  0x76   :  { %v2011_v26 = vld [vmem:[#allocation11 + $0xcc] ss:$16 sps:$4 sm:$0xff]   ;;  %v2013_v27 = vld [vmem:[#allocation11 + $0xc0] ss:$16 sps:$4 sm:$0xff]   ;;  %v2014_v28 = vld [vmem:[#allocation11 + $0xc8] ss:$16 sps:$4 sm:$0xff]  }
  0x77   :  { %v2015_v29 = vld [vmem:[#allocation11 + $0xe4] ss:$16 sps:$4 sm:$0xff]   ;;  %v2017_v30 = vld [vmem:[#allocation11 + $0xec] ss:$16 sps:$4 sm:$0xff]   ;;  %v2019_v31 = vld [vmem:[#allocation11 + $0xe0] ss:$16 sps:$4 sm:$0xff]  }
  0x78   :  { %374 = vmatpush1.bf16.msra.mxu0 %v1989_v11  ;;  %447 = vmatpush1.bf16.msra.mxu1 %v1990_v12  ;;  %v2020_v32 = vld [vmem:[#allocation11 + $0xe8] ss:$16 sps:$4 sm:$0xff]   ;;  %v2557_v33 = vld [vmem:[#allocation13 + $0x4] ss:$16 sps:$4 sm:$0xff]   ;;  %v2559_v34 = vld [vmem:[#allocation13 + $0xc] ss:$16 sps:$4 sm:$0xff]  }
  0x79   :  { %375 = vmatprep.subr.bf16.mxu0 %v1991_v13  ;;  %448 = vmatprep.subr.bf16.mxu1 %v1993_v14  ;;  %v2021_v35 = vld [vmem:[#allocation5] sm:$0xff]   ;;  %v2563_v37 = vld [vmem:[#allocation13 + $0x8] ss:$16 sps:$4 sm:$0xff]   ;;  %v2569_v39 = vld [vmem:[#allocation13 + $0x2c] ss:$16 sps:$4 sm:$0xff]   ;;  %v166_v9 = vshrl.u32 %v165_v8, 7 }
  0x7a   :  { %v2561_v36 = vld [vmem:[#allocation13] ss:$16 sps:$4 sm:$0xff]   ;;  %v2567_v38 = vld [vmem:[#allocation13 + $0x24] ss:$16 sps:$4 sm:$0xff]   ;;  %v2575_v41 = vld [vmem:[#allocation13 + $0x28] ss:$16 sps:$4 sm:$0xff]  }
  0x7b   :  { %v2571_v40 = vld [vmem:[#allocation13 + $0x20] ss:$16 sps:$4 sm:$0xff]   ;;  %v2579_v42 = vld [vmem:[#allocation13 + $0x44] ss:$16 sps:$4 sm:$0xff]   ;;  %v2581_v43 = vld [vmem:[#allocation13 + $0x4c] ss:$16 sps:$4 sm:$0xff]  }
  0x7c   :  { %376 = vmatpush1.bf16.msra.mxu0 %v1995_v15  ;;  %449 = vmatpush1.bf16.msra.mxu1 %v1996_v16  ;;  %v2585_v45 = vld [vmem:[#allocation13 + $0x40] ss:$16 sps:$4 sm:$0xff]   ;;  %v2587_v46 = vld [vmem:[#allocation13 + $0x48] ss:$16 sps:$4 sm:$0xff]   ;;  %v2591_v47 = vld [vmem:[#allocation13 + $0x64] ss:$16 sps:$4 sm:$0xff]  }
  0x7d   :  { %377 = vmatprep.subr.bf16.mxu0 %v1997_v17  ;;  %450 = vmatprep.subr.bf16.mxu1 %v1999_v18  ;;  %v2595_v48 = vld [vmem:[#allocation13 + $0x6c] ss:$16 sps:$4 sm:$0xff]   ;;  %v2597_v49 = vld [vmem:[#allocation13 + $0x60] ss:$16 sps:$4 sm:$0xff]   ;;  %v2599_v50 = vld [vmem:[#allocation13 + $0x68] ss:$16 sps:$4 sm:$0xff]  }
  0x7e   :  { %v2603_v51 = vld [vmem:[#allocation13 + $0x84] ss:$16 sps:$4 sm:$0xff]   ;;  %v2607_v52 = vld [vmem:[#allocation13 + $0x8c] ss:$16 sps:$4 sm:$0xff]   ;;  %v2611_v54 = vld [vmem:[#allocation13 + $0x80] ss:$16 sps:$4 sm:$0xff]  }
  0x7f   :  { %v2047_v53 = vld [vmem:[#allocation5 + $0x10] sm:$0xff]   ;;  %v2613_v55 = vld [vmem:[#allocation13 + $0x88] ss:$16 sps:$4 sm:$0xff]   ;;  %v2617_v57 = vld [vmem:[#allocation13 + $0xac] ss:$16 sps:$4 sm:$0xff]   ;;  %v175_v10 = vsub.s32 2, %v166_v9 }
  0x80   :  { %378 = vmatpush1.bf16.msra.mxu0 %v2001_v19  ;;  %451 = vmatpush1.bf16.msra.mxu1 %v2002_v20  ;;  %v2615_v56 = vld [vmem:[#allocation13 + $0xa4] ss:$16 sps:$4 sm:$0xff]   ;;  %v2623_v58 = vld [vmem:[#allocation13 + $0xa0] ss:$16 sps:$4 sm:$0xff]   ;;  %v2627_v59 = vld [vmem:[#allocation13 + $0xa8] ss:$16 sps:$4 sm:$0xff]  }
  0x81   :  { %379 = vmatprep.subr.bf16.mxu0 %v2003_v21  ;;  %452 = vmatprep.subr.bf16.mxu1 %v2005_v22  ;;  %v2631_v60 = vld [vmem:[#allocation13 + $0xc4] ss:$16 sps:$4 sm:$0xff]   ;;  %v2633_v61 = vld [vmem:[#allocation13 + $0xcc] ss:$16 sps:$4 sm:$0xff]   ;;  %v2639_v63 = vld [vmem:[#allocation13 + $0xc0] ss:$16 sps:$4 sm:$0xff]  }
  0x82   :  { %v2060_v62 = vld [vmem:[#allocation5 + $0x18] sm:$0xff]   ;;  %v2645_v2 = vld [vmem:[#allocation13 + $0xe4] ss:$16 sps:$4 sm:$0xff]   ;;  %v2651_v4 = vld [vmem:[#allocation13 + $0xe0] ss:$16 sps:$4 sm:$0xff]   ;;  %v179_v11 = vsub.s32 3, %v166_v9 }
  0x83   :  { %v2641_v1 = vld [vmem:[#allocation13 + $0xc8] ss:$16 sps:$4 sm:$0xff]   ;;  %v2647_v3 = vld [vmem:[#allocation13 + $0xec] ss:$16 sps:$4 sm:$0xff]   ;;  %v119_v6 = vld [vmem:[#allocation8] sm:$0xff]  ;;  %v167_v12 = vsub.s32 0, %v166_v9 }
  0x84   :  { %380 = vmatpush1.bf16.msra.mxu0 %v2007_v23  ;;  %453 = vmatpush1.bf16.msra.mxu1 %v2008_v24  ;;  %v2653_v5 = vld [vmem:[#allocation13 + $0xe8] ss:$16 sps:$4 sm:$0xff]   ;;  %v556_v7 = vpack.c.bf16 %v119_v6, %v119_v6  ;;  %v163_v13 = vld [vmem:[%s3097_s5] sm:$0xf]  ;;  %v171_v14 = vsub.s32 1, %v166_v9  ;;  %vm2417_vm0 = vmmov 0  }
  0x85   :  { %381 = vmatprep.subr.bf16.mxu0 %v2009_v25  ;;  %454 = vmatprep.subr.bf16.mxu1 %v2011_v26  ;;  %v2700_v15 = vrot.slane %v163_v13, %v175_v10  ;;  %v2706_v18 = vrot.slane %v163_v13, %v179_v11  ;;  %v168_v19 = vrot.slane %v163_v13, %v167_v12  ;;  %s2418_s30 = smov [#allocation16]  }
  0x86   :  { %v172_v22 = vrot.slane %v163_v13, %v171_v14  ;;  %s1810_s24 = sshll.u32 %s2418_s30, 4  ;;  %s1811_s24 = int_to_ptr.vmem [resolvable:$true] %s1810_s24 }
  0x87   :  { %s2373_s13 = scalar_lea.vmem %s1811_s24, 128  ;;  %p2378_p7 = scmp.lt.s32.totalorder %s1811_s24, %s1811_s24 }
  0x88   :  { %382 = vmatpush1.bf16.msra.mxu0 %v2013_v27  ;;  %455 = vmatpush1.bf16.msra.mxu1 %v2014_v28  ;;  %p2374_p6 = scmp.ne.s32.totalorder %s1811_s24, %s2373_s13  ;;  %p2379_p8 = scmp.lt.s32.totalorder %s2373_s13, %s2373_s13 }
  0x89   :  { %383 = vmatprep.subr.bf16.mxu0 %v2015_v29  ;;  %456 = vmatprep.subr.bf16.mxu1 %v2017_v30 }
  0x8a   :  { %p2380_p9 = por %p2379_p8, %p2378_p7 }
  0x8c   :  { %384 = vmatpush1.bf16.msra.mxu0 %v2019_v31  ;;  %457 = vmatpush1.bf16.msra.mxu1 %v2020_v32  ;;  %p2381_p10 = pnand %p2380_p9, %p2374_p6 }
  0x8d   :  { %749 = vmatprep.subr.bf16.mxu0 %v2557_v33  ;;  %790 = vmatprep.subr.bf16.mxu1 %v2559_v34 }
  0x8f   :  { %402 = vmatmul.mubr.bf16.vlgmr.msra.gmra.mrb[0].mxu0 %v2021_v35  ;;  %475 = vmatmul.mubr.bf16.vlgmr.msra.gmra.mrb[0].mxu1 %v2021_v35 }
  0x90   :  { %750 = vmatpush1.bf16.msra.mxu0 %v2561_v36  ;;  %791 = vmatpush1.bf16.msra.mxu1 %v2563_v37 }
  0x91   :  { %751 = vmatprep.subr.bf16.mxu0 %v2567_v38  ;;  %792 = vmatprep.subr.bf16.mxu1 %v2569_v39 }
  0x92   :  { %411 = vmatprep.mubr.bf16.mxu0 %v3101_v0  ;;  %484 = vmatprep.mubr.bf16.mxu1 %v3101_v0 }
  0x94   :  { %752 = vmatpush1.bf16.msra.mxu0 %v2571_v40  ;;  %793 = vmatpush1.bf16.msra.mxu1 %v2575_v41 }
  0x95   :  { %753 = vmatprep.subr.bf16.mxu0 %v2579_v42  ;;  %794 = vmatprep.subr.bf16.mxu1 %v2581_v43 }
  0x97   :  { %412 = vmatmul.mubr.bf16.gmra.mrb[4].mxu0 %v2034_v44  ;;  %485 = vmatmul.mubr.bf16.gmra.mrb[4].mxu1 %v2034_v44 }
  0x98   :  { %754 = vmatpush1.bf16.msra.mxu0 %v2585_v45  ;;  %795 = vmatpush1.bf16.msra.mxu1 %v2587_v46 }
  0x99   :  { %755 = vmatprep.subr.bf16.mxu0 %v2591_v47  ;;  %796 = vmatprep.subr.bf16.mxu1 %v2595_v48 }
  0x9a   :  { %421 = vmatprep.mubr.bf16.mxu0 %v3101_v0  ;;  %494 = vmatprep.mubr.bf16.mxu1 %v3101_v0 }
  0x9c   :  { %756 = vmatpush1.bf16.msra.mxu0 %v2597_v49  ;;  %797 = vmatpush1.bf16.msra.mxu1 %v2599_v50 }
  0x9d   :  { %757 = vmatprep.subr.bf16.mxu0 %v2603_v51  ;;  %798 = vmatprep.subr.bf16.mxu1 %v2607_v52 }
  0x9f   :  { %422 = vmatmul.mubr.bf16.gmra.mrb[8].mxu0 %v2047_v53  ;;  %495 = vmatmul.mubr.bf16.gmra.mrb[8].mxu1 %v2047_v53 }
  0xa0   :  { %758 = vmatpush1.bf16.msra.mxu0 %v2611_v54  ;;  %799 = vmatpush1.bf16.msra.mxu1 %v2613_v55 }
  0xa1   :  { %759 = vmatprep.subr.bf16.mxu0 %v2615_v56  ;;  %800 = vmatprep.subr.bf16.mxu1 %v2617_v57 }
  0xa2   :  { %431 = vmatprep.mubr.bf16.mxu0 %v3101_v0  ;;  %504 = vmatprep.mubr.bf16.mxu1 %v3101_v0 }
  0xa4   :  { %760 = vmatpush1.bf16.msra.mxu0 %v2623_v58  ;;  %801 = vmatpush1.bf16.msra.mxu1 %v2627_v59 }
  0xa5   :  { %761 = vmatprep.subr.bf16.mxu0 %v2631_v60  ;;  %802 = vmatprep.subr.bf16.mxu1 %v2633_v61 }
  0xa7   :  { %432 = vmatmul.mubr.bf16.gmra.mrb[12].mxu0 %v2060_v62  ;;  %505 = vmatmul.mubr.bf16.gmra.mrb[12].mxu1 %v2060_v62 }
  0xa8   :  { %762 = vmatpush1.bf16.msra.mxu0 %v2639_v63  ;;  %803 = vmatpush1.bf16.msra.mxu1 %v2641_v1 }
  0xa9   :  { %763 = vmatprep.subr.bf16.mxu0 %v2645_v2  ;;  %804 = vmatprep.subr.bf16.mxu1 %v2647_v3 }
  0xaa   :  { %781 = vmatprep.mubr.bf16.mxu0 %v3101_v0  ;;  %822 = vmatprep.mubr.bf16.mxu1 %v3101_v0 }
  0xac   :  { %764 = vmatpush1.bf16.msra.mxu0 %v2651_v4  ;;  %805 = vmatpush1.bf16.msra.mxu1 %v2653_v5 }
  0xad   :  { %867 = vmatprep.subr.bf16.mxu0 %v2557_v33  ;;  %908 = vmatprep.subr.bf16.mxu1 %v2559_v34 }
  0xaf   :  { %782 = vmatmul.mubr.bf16.vlgmr.msra.gmra.mrb[16].mxu0 %v556_v7  ;;  %823 = vmatmul.mubr.bf16.vlgmr.msra.gmra.mrb[16].mxu1 %v556_v7 }
  0xb0   :  { %868 = vmatpush1.bf16.msra.mxu0 %v2561_v36  ;;  %909 = vmatpush1.bf16.msra.mxu1 %v2563_v37 }
  0xb1   :  { %869 = vmatprep.subr.bf16.mxu0 %v2567_v38  ;;  %910 = vmatprep.subr.bf16.mxu1 %v2569_v39 }
  0xb2   :  { %899 = vmatprep.mubr.bf16.mxu0 %v3101_v0  ;;  %940 = vmatprep.mubr.bf16.mxu1 %v3101_v0 }
  0xb4   :  { %870 = vmatpush1.bf16.msra.mxu0 %v2571_v40  ;;  %911 = vmatpush1.bf16.msra.mxu1 %v2575_v41 }
  0xb5   :  { %871 = vmatprep.subr.bf16.mxu0 %v2579_v42  ;;  %912 = vmatprep.subr.bf16.mxu1 %v2581_v43 }
  0xb8   :  { %872 = vmatpush1.bf16.msra.mxu0 %v2585_v45  ;;  %913 = vmatpush1.bf16.msra.mxu1 %v2587_v46 }
  0xb9   :  { %873 = vmatprep.subr.bf16.mxu0 %v2591_v47  ;;  %914 = vmatprep.subr.bf16.mxu1 %v2595_v48 }
  0xbc   :  { %874 = vmatpush1.bf16.msra.mxu0 %v2597_v49  ;;  %915 = vmatpush1.bf16.msra.mxu1 %v2599_v50 }
  0xbd   :  { %875 = vmatprep.subr.bf16.mxu0 %v2603_v51  ;;  %916 = vmatprep.subr.bf16.mxu1 %v2607_v52 }
  0xc0   :  { %876 = vmatpush1.bf16.msra.mxu0 %v2611_v54  ;;  %917 = vmatpush1.bf16.msra.mxu1 %v2613_v55 }
  0xc1   :  { %877 = vmatprep.subr.bf16.mxu0 %v2615_v56  ;;  %918 = vmatprep.subr.bf16.mxu1 %v2617_v57 }
  0xc4   :  { %878 = vmatpush1.bf16.msra.mxu0 %v2623_v58  ;;  %919 = vmatpush1.bf16.msra.mxu1 %v2627_v59 }
  0xc5   :  { %879 = vmatprep.subr.bf16.mxu0 %v2631_v60  ;;  %920 = vmatprep.subr.bf16.mxu1 %v2633_v61 }
  0xc8   :  { %880 = vmatpush1.bf16.msra.mxu0 %v2639_v63  ;;  %921 = vmatpush1.bf16.msra.mxu1 %v2641_v1 }
  0xc9   :  { %881 = vmatprep.subr.bf16.mxu0 %v2645_v2  ;;  %922 = vmatprep.subr.bf16.mxu1 %v2647_v3 }
  0xcc   :  { %882 = vmatpush1.bf16.msra.mxu0 %v2651_v4  ;;  %923 = vmatpush1.bf16.msra.mxu1 %v2653_v5 }
  0xcd   :  { %985 = vmatprep.subr.bf16.mxu0 %v2557_v33  ;;  %1026 = vmatprep.subr.bf16.mxu1 %v2559_v34 }
 0x162   :  { %v2702_v16 = vpop.f32.mrb[0].mxu0  ;;  %v2704_v17 = vpop.f32.mrb[0].mxu1 }
 0x163   :  { %v405_v20 = vpop.f32.mrb[1].mxu0  ;;  %v478_v21 = vpop.f32.mrb[1].mxu1 }
 0x164   :  { %v407_v23 = vpop.f32.mrb[2].mxu0  ;;  %v480_v24 = vpop.f32.mrb[2].mxu1 }
 0x165   :  { %v2708_v25 = vadd.f32 %v407_v23, %v168_v19  ;;  %v409_v26 = vpop.f32.mrb[3].mxu0  ;;  %v2711_v27 = vadd.f32 %v480_v24, %v2700_v15  ;;  %v482_v28 = vpop.f32.mrb[3].mxu1 }
 0x166   :  { %v2713_v29 = vadd.f32 %v409_v26, %v172_v22  ;;  %v2716_v30 = vadd.f32 %v482_v28, %v2706_v18 }
 0x16a   :  { %v413_v31 = vpop.f32.mrb[4].mxu0  ;;  %v486_v32 = vpop.f32.mrb[4].mxu1 }
 0x16b   :  { %v2718_v35 = vadd.f32 %v413_v31, %v168_v19  ;;  %v415_v44 = vpop.f32.mrb[5].mxu0  ;;  %v2721_v53 = vadd.f32 %v486_v32, %v2700_v15  ;;  %v488_v62 = vpop.f32.mrb[5].mxu1 }
 0x16c   :  { %v2723_v6 = vadd.f32 %v415_v44, %v172_v22  ;;  %v417_v7 = vpop.f32.mrb[6].mxu0  ;;  %v2726_v8 = vadd.f32 %v488_v62, %v2706_v18  ;;  %v490_v9 = vpop.f32.mrb[6].mxu1 }
 0x16d   :  { %v2728_v10 = vadd.f32 %v417_v7, %v168_v19  ;;  %v419_v11 = vpop.f32.mrb[7].mxu0  ;;  %v2731_v12 = vadd.f32 %v490_v9, %v2700_v15  ;;  %v492_v13 = vpop.f32.mrb[7].mxu1 }
 0x16e   :  { %3103 = vst [vmem:[#allocation22_spill] sm:$0xff] %v2726_v8  ;;  %v2733_v14 = vadd.f32 %v419_v11, %v172_v22  ;;  %v2736_v23 = vadd.f32 %v492_v13, %v2706_v18 }
 0x16f   :  { %3104 = vst [vmem:[#allocation23_spill] sm:$0xff] %v2728_v10  ;;  %3105 = vst [vmem:[#allocation24_spill] sm:$0xff] %v2731_v12 }
 0x170   :  { %3106 = vst [vmem:[#allocation25_spill] sm:$0xff] %v2733_v14  ;;  %3107 = vst [vmem:[#allocation26_spill] sm:$0xff] %v2736_v23 }
 0x172   :  { %v423_v24 = vpop.f32.mrb[8].mxu0  ;;  %v496_v26 = vpop.f32.mrb[8].mxu1 }
 0x173   :  { %v2738_v28 = vadd.f32 %v423_v24, %v168_v19  ;;  %v425_v31 = vpop.f32.mrb[9].mxu0  ;;  %v2741_v32 = vadd.f32 %v496_v26, %v2700_v15  ;;  %v498_v44 = vpop.f32.mrb[9].mxu1 }
 0x174   :  { %v2743_v62 = vadd.f32 %v425_v31, %v172_v22  ;;  %v427_v7 = vpop.f32.mrb[10].mxu0  ;;  %v2746_v9 = vadd.f32 %v498_v44, %v2706_v18  ;;  %v500_v11 = vpop.f32.mrb[10].mxu1 }
 0x175   :  { %3108 = vst [vmem:[#allocation27_spill] sm:$0xff] %v2738_v28  ;;  %3109 = vst [vmem:[#allocation28_spill] sm:$0xff] %v2741_v32  ;;  %v2748_v0 = vadd.f32 %v427_v7, %v168_v19  ;;  %v429_v13 = vpop.f32.mrb[11].mxu0  ;;  %v2751_v23 = vadd.f32 %v500_v11, %v2700_v15  ;;  %v502_v24 = vpop.f32.mrb[11].mxu1 }
 0x176   :  { %3110 = vst [vmem:[#allocation29_spill] sm:$0xff] %v2743_v62  ;;  %3111 = vst [vmem:[#allocation30_spill] sm:$0xff] %v2746_v9  ;;  %v2753_v28 = vadd.f32 %v429_v13, %v172_v22  ;;  %v2756_v26 = vadd.f32 %v502_v24, %v2706_v18 }
 0x177   :  { %3112 = vst [vmem:[#allocation31_spill] sm:$0xff] %v2748_v0  ;;  %3113 = vst [vmem:[#allocation32_spill] sm:$0xff] %v2751_v23 }
 0x178   :  { %3114 = vst [vmem:[#allocation33_spill] sm:$0xff] %v2753_v28  ;;  %3115 = vst [vmem:[#allocation34_spill] sm:$0xff] %v2756_v26 }
 0x17a   :  { %v433_v32 = vpop.f32.mrb[12].mxu0  ;;  %v506_v31 = vpop.f32.mrb[12].mxu1 }
 0x17b   :  { %v2758_v62 = vadd.f32 %v433_v32, %v168_v19  ;;  %v435_v14 = vpop.f32.mrb[13].mxu0  ;;  %v2761_v44 = vadd.f32 %v506_v31, %v2700_v15  ;;  %v508_v7 = vpop.f32.mrb[13].mxu1 }
 0x17c   :  { %v2763_v0 = vadd.f32 %v435_v14, %v172_v22  ;;  %v437_v9 = vpop.f32.mrb[14].mxu0  ;;  %v2766_v11 = vadd.f32 %v508_v7, %v2706_v18  ;;  %v510_v13 = vpop.f32.mrb[14].mxu1  ;;  %v404_v14 = vadd.f32 %v2702_v16, %v168_v19  ;;  %v406_v7 = vadd.f32 %v405_v20, %v172_v22 }
 0x17d   :  { %3116 = vst [vmem:[#allocation35_spill] sm:$0xff] %v2758_v62  ;;  %3117 = vst [vmem:[#allocation36_spill] sm:$0xff] %v2761_v44  ;;  %v2768_v28 = vadd.f32 %v437_v9, %v168_v19  ;;  %v439_v24 = vpop.f32.mrb[15].mxu0  ;;  %v2771_v26 = vadd.f32 %v510_v13, %v2700_v15  ;;  %v512_v32 = vpop.f32.mrb[15].mxu1 }
 0x17e   :  { %3118 = vst [vmem:[#allocation37_spill] sm:$0xff] %v2763_v0  ;;  %3119 = vst [vmem:[#allocation38_spill] sm:$0xff] %v2766_v11  ;;  %v2773_v62 = vadd.f32 %v439_v24, %v172_v22  ;;  %v2776_v31 = vadd.f32 %v512_v32, %v2706_v18  ;;  %v477_v0 = vadd.f32 %v2704_v17, %v2700_v15 }
 0x17f   :  { %3120 = vst [vmem:[#allocation39_spill] sm:$0xff] %v2768_v28  ;;  %3121 = vst [vmem:[#allocation40_spill] sm:$0xff] %v2771_v26  ;;  %v479_v11 = vadd.f32 %v478_v21, %v2706_v18 }
 0x180   :  { %3122 = vst [vmem:[#allocation41_spill] sm:$0xff] %v2773_v62  ;;  %3123 = vst [vmem:[#allocation42_spill] sm:$0xff] %v2776_v31 }
 0x182   :  { %v783_v9 = vpop.f32.mrb[16].mxu0  ;;  %v824_v28 = vpop.f32.mrb[16].mxu1 }
 0x183   :  { %v831_v44 = vadd.f32 %v783_v9, %v404_v14  ;;  %v833_v23 = vadd.f32 %v824_v28, %v477_v0  ;;  %v785_v13 = vpop.f32.mrb[17].mxu0  ;;  %v826_v26 = vpop.f32.mrb[17].mxu1  ;;  %v121_v28 = vld [vmem:[#allocation10] sm:$0xff]  ;;  %v3124_v14 = vmov 0  }
 0x184   :  { %v832_v12 = vadd.f32 %v785_v13, %v406_v7  ;;  %v834_v24 = vadd.f32 %v826_v26, %v479_v11  ;;  %v787_v62 = vpop.f32.mrb[18].mxu0  ;;  %v828_v10 = vpop.f32.mrb[18].mxu1 }
 0x185   :  { %v1897_v32 = vmul.f32 -1.442695, %v831_v44  ;;  %v788_v31 = vpop.f32.mrb[19].mxu0  ;;  %v829_v8 = vpop.f32.mrb[19].mxu1  ;;  %v1899_v15 = vmul.f32 -1.442695, %v833_v23 }
 0x186   :  { %v1898_v16 = vmul.f32 -1.442695, %v832_v12 }
 0x187   :  { %2081 = vpow2.f32 %v1897_v32 }
 0x188   :  { %2083 = vpow2.f32 %v1898_v16 }
 0x189   :  { %2085 = vtanh.f32 %v834_v24 }
 0x18a   :  { %2087 = vpow2.f32 %v1899_v15 }
 0x191   :  { %v2082_v17 = vpop.eup %2081 }
 0x192   :  { %v844_v19 = vadd.f32 1.0, %v2082_v17  ;;  %v2084_v18 = vpop.eup %2083 }
 0x193   :  { %v845_v0 = vadd.f32 1.0, %v2084_v18  ;;  %v2086_v20 = vpop.eup %2085 }
 0x194   :  { %2089 = vrcp.f32 %v844_v19  ;;  %v2088_v21 = vpop.eup %2087 }
 0x195   :  { %2091 = vrcp.f32 %v845_v0  ;;  %v846_v26 = vadd.f32 1.0, %v2088_v21 }
 0x197   :  { %2093 = vrcp.f32 %v846_v26 }
 0x19e   :  { %v2090_v22 = vpop.eup %2089 }
 0x19f   :  { %v855_v10 = vmul.f32 %v2090_v22, %v2086_v20  ;;  %v2092_v62 = vpop.eup %2091 }
 0x1a0   :  { %v854_v8 = vmul.f32 %v2092_v62, %v121_v28 }
 0x1a1   :  { %v2094_v23 = vpop.eup %2093 }
 0x1a2   :  { %v2782_v12 = vadd.f32 %v855_v10, %v854_v8 }
 0x1a4   :  { %2095 = vtanh.f32 %v2782_v12 }
 0x1ae   :  { %v2096_v44 = vpop.eup %2095 }
 0x1af   :  { %v858_v11 = vmul.f32 %v2096_v44, %v2094_v23 }
 0x1b1   :  { %v866_v31 = vpack.c.bf16 %v858_v11, %v858_v11 }
 0x1b3   :  { %900 = vmatmul.mubr.bf16.vlgmr.msra.gmra.mrb[20].mxu0 %v866_v31  ;;  %941 = vmatmul.mubr.bf16.vlgmr.msra.gmra.mrb[20].mxu1 %v866_v31 }
 0x1b4   :  { %986 = vmatpush1.bf16.msra.mxu0 %v2561_v36  ;;  %1027 = vmatpush1.bf16.msra.mxu1 %v2563_v37 }
 0x1b5   :  { %987 = vmatprep.subr.bf16.mxu0 %v2567_v38  ;;  %1028 = vmatprep.subr.bf16.mxu1 %v2569_v39 }
 0x1b6   :  { %1017 = vmatprep.mubr.bf16.mxu0 %v3124_v14  ;;  %1058 = vmatprep.mubr.bf16.mxu1 %v3124_v14 }
 0x1b8   :  { %988 = vmatpush1.bf16.msra.mxu0 %v2571_v40  ;;  %1029 = vmatpush1.bf16.msra.mxu1 %v2575_v41 }
 0x1b9   :  { %989 = vmatprep.subr.bf16.mxu0 %v2579_v42  ;;  %1030 = vmatprep.subr.bf16.mxu1 %v2581_v43 }
 0x1bc   :  { %990 = vmatpush1.bf16.msra.mxu0 %v2585_v45  ;;  %1031 = vmatpush1.bf16.msra.mxu1 %v2587_v46 }
 0x1bd   :  { %991 = vmatprep.subr.bf16.mxu0 %v2591_v47  ;;  %1032 = vmatprep.subr.bf16.mxu1 %v2595_v48 }
 0x1c0   :  { %992 = vmatpush1.bf16.msra.mxu0 %v2597_v49  ;;  %1033 = vmatpush1.bf16.msra.mxu1 %v2599_v50 }
 0x1c1   :  { %993 = vmatprep.subr.bf16.mxu0 %v2603_v51  ;;  %1034 = vmatprep.subr.bf16.mxu1 %v2607_v52 }
 0x1c4   :  { %994 = vmatpush1.bf16.msra.mxu0 %v2611_v54  ;;  %1035 = vmatpush1.bf16.msra.mxu1 %v2613_v55 }
 0x1c5   :  { %995 = vmatprep.subr.bf16.mxu0 %v2615_v56  ;;  %1036 = vmatprep.subr.bf16.mxu1 %v2617_v57 }
 0x1c8   :  { %996 = vmatpush1.bf16.msra.mxu0 %v2623_v58  ;;  %1037 = vmatpush1.bf16.msra.mxu1 %v2627_v59 }
 0x1c9   :  { %997 = vmatprep.subr.bf16.mxu0 %v2631_v60  ;;  %1038 = vmatprep.subr.bf16.mxu1 %v2633_v61 }
 0x1cc   :  { %998 = vmatpush1.bf16.msra.mxu0 %v2639_v63  ;;  %1039 = vmatpush1.bf16.msra.mxu1 %v2641_v1 }
 0x1cd   :  { %999 = vmatprep.subr.bf16.mxu0 %v2645_v2  ;;  %1040 = vmatprep.subr.bf16.mxu1 %v2647_v3 }
 0x1d0   :  { %1000 = vmatpush1.bf16.msra.mxu0 %v2651_v4  ;;  %1041 = vmatpush1.bf16.msra.mxu1 %v2653_v5 }
 0x1d1   :  { %1103 = vmatprep.subr.bf16.mxu0 %v2557_v33  ;;  %1144 = vmatprep.subr.bf16.mxu1 %v2559_v34 }
 0x286   :  { %v901_v7 = vpop.f32.mrb[20].mxu0  ;;  %v942_v9 = vpop.f32.mrb[20].mxu1 }
 0x287   :  { %v949_v13 = vadd.f32 %v901_v7, %v2708_v25  ;;  %v951_v24 = vadd.f32 %v942_v9, %v2711_v27  ;;  %v903_v32 = vpop.f32.mrb[21].mxu0  ;;  %v944_v16 = vpop.f32.mrb[21].mxu1 }
 0x288   :  { %v950_v15 = vadd.f32 %v903_v32, %v2713_v29  ;;  %v952_v17 = vadd.f32 %v944_v16, %v2716_v30  ;;  %v905_v19 = vpop.f32.mrb[22].mxu0  ;;  %v946_v18 = vpop.f32.mrb[22].mxu1 }
 0x289   :  { %v1900_v0 = vmul.f32 -1.442695, %v949_v13  ;;  %v906_v20 = vpop.f32.mrb[23].mxu0  ;;  %v947_v21 = vpop.f32.mrb[23].mxu1  ;;  %v1902_v28 = vmul.f32 -1.442695, %v951_v24 }
 0x28a   :  { %v1901_v22 = vmul.f32 -1.442695, %v950_v15 }
 0x28b   :  { %2097 = vpow2.f32 %v1900_v0  ;;  %v3125_v0 = vld [vmem:[#allocation22_spill] sm:$0xff] }
 0x28c   :  { %2099 = vpow2.f32 %v1901_v22 }
 0x28d   :  { %2101 = vtanh.f32 %v952_v17 }
 0x28e   :  { %2103 = vpow2.f32 %v1902_v28 }
 0x295   :  { %v2098_v10 = vpop.eup %2097 }
 0x296   :  { %v962_v62 = vadd.f32 1.0, %v2098_v10  ;;  %v2100_v25 = vpop.eup %2099 }
 0x297   :  { %v963_v27 = vadd.f32 1.0, %v2100_v25  ;;  %v2102_v29 = vpop.eup %2101 }
 0x298   :  { %2105 = vrcp.f32 %v962_v62  ;;  %v2104_v26 = vpop.eup %2103 }
 0x299   :  { %2107 = vrcp.f32 %v963_v27  ;;  %v964_v44 = vadd.f32 1.0, %v2104_v26 }
 0x29b   :  { %2109 = vrcp.f32 %v964_v44 }
 0x2a2   :  { %v2106_v30 = vpop.eup %2105 }
 0x2a3   :  { %v973_v8 = vmul.f32 %v2106_v30, %v2102_v29  ;;  %v2108_v23 = vpop.eup %2107 }
 0x2a4   :  { %v972_v11 = vmul.f32 %v2108_v23, %v2782_v12 }
 0x2a5   :  { %v2110_v7 = vpop.eup %2109 }
 0x2a6   :  { %v2824_v31 = vadd.f32 %v973_v8, %v972_v11 }
 0x2a8   :  { %2111 = vtanh.f32 %v2824_v31 }
 0x2b2   :  { %v2112_v9 = vpop.eup %2111 }
 0x2b3   :  { %v976_v13 = vmul.f32 %v2112_v9, %v2110_v7 }
 0x2b5   :  { %v984_v24 = vpack.c.bf16 %v976_v13, %v976_v13 }
 0x2b7   :  { %1018 = vmatmul.mubr.bf16.vlgmr.msra.gmra.mrb[24].mxu0 %v984_v24  ;;  %1059 = vmatmul.mubr.bf16.vlgmr.msra.gmra.mrb[24].mxu1 %v984_v24 }
 0x2b8   :  { %1104 = vmatpush1.bf16.msra.mxu0 %v2561_v36  ;;  %1145 = vmatpush1.bf16.msra.mxu1 %v2563_v37 }
 0x2b9   :  { %1105 = vmatprep.subr.bf16.mxu0 %v2567_v38  ;;  %1146 = vmatprep.subr.bf16.mxu1 %v2569_v39 }
 0x2ba   :  { %1135 = vmatprep.mubr.bf16.mxu0 %v3124_v14  ;;  %1176 = vmatprep.mubr.bf16.mxu1 %v3124_v14 }
 0x2bc   :  { %1106 = vmatpush1.bf16.msra.mxu0 %v2571_v40  ;;  %1147 = vmatpush1.bf16.msra.mxu1 %v2575_v41 }
 0x2bd   :  { %1107 = vmatprep.subr.bf16.mxu0 %v2579_v42  ;;  %1148 = vmatprep.subr.bf16.mxu1 %v2581_v43 }
 0x2c0   :  { %1108 = vmatpush1.bf16.msra.mxu0 %v2585_v45  ;;  %1149 = vmatpush1.bf16.msra.mxu1 %v2587_v46 }
 0x2c1   :  { %1109 = vmatprep.subr.bf16.mxu0 %v2591_v47  ;;  %1150 = vmatprep.subr.bf16.mxu1 %v2595_v48 }
 0x2c4   :  { %1110 = vmatpush1.bf16.msra.mxu0 %v2597_v49  ;;  %1151 = vmatpush1.bf16.msra.mxu1 %v2599_v50 }
 0x2c5   :  { %1111 = vmatprep.subr.bf16.mxu0 %v2603_v51  ;;  %1152 = vmatprep.subr.bf16.mxu1 %v2607_v52 }
 0x2c8   :  { %1112 = vmatpush1.bf16.msra.mxu0 %v2611_v54  ;;  %1153 = vmatpush1.bf16.msra.mxu1 %v2613_v55 }
 0x2c9   :  { %1113 = vmatprep.subr.bf16.mxu0 %v2615_v56  ;;  %1154 = vmatprep.subr.bf16.mxu1 %v2617_v57 }
 0x2cc   :  { %1114 = vmatpush1.bf16.msra.mxu0 %v2623_v58  ;;  %1155 = vmatpush1.bf16.msra.mxu1 %v2627_v59 }
 0x2cd   :  { %1115 = vmatprep.subr.bf16.mxu0 %v2631_v60  ;;  %1156 = vmatprep.subr.bf16.mxu1 %v2633_v61 }
 0x2d0   :  { %1116 = vmatpush1.bf16.msra.mxu0 %v2639_v63  ;;  %1157 = vmatpush1.bf16.msra.mxu1 %v2641_v1 }
 0x2d1   :  { %1117 = vmatprep.subr.bf16.mxu0 %v2645_v2  ;;  %1158 = vmatprep.subr.bf16.mxu1 %v2647_v3 }
 0x2d4   :  { %1118 = vmatpush1.bf16.msra.mxu0 %v2651_v4  ;;  %1159 = vmatpush1.bf16.msra.mxu1 %v2653_v5 }
 0x2d5   :  { %1221 = vmatprep.subr.bf16.mxu0 %v2557_v33  ;;  %1262 = vmatprep.subr.bf16.mxu1 %v2559_v34 }
 0x38a   :  { %v1019_v12 = vpop.f32.mrb[24].mxu0  ;;  %v1060_v32 = vpop.f32.mrb[24].mxu1 }
 0x38b   :  { %v1067_v16 = vadd.f32 %v1019_v12, %v2718_v35  ;;  %v1069_v15 = vadd.f32 %v1060_v32, %v2721_v53  ;;  %v1021_v17 = vpop.f32.mrb[25].mxu0  ;;  %v1062_v19 = vpop.f32.mrb[25].mxu1 }
 0x38c   :  { %v1068_v18 = vadd.f32 %v1021_v17, %v2723_v6  ;;  %v1070_v20 = vadd.f32 %v1062_v19, %v3125_v0  ;;  %v1023_v21 = vpop.f32.mrb[26].mxu0  ;;  %v1064_v22 = vpop.f32.mrb[26].mxu1  ;;  %v3127_v19 = vld [vmem:[#allocation24_spill] sm:$0xff] }
 0x38d   :  { %v1903_v28 = vmul.f32 -1.442695, %v1067_v16  ;;  %v1024_v10 = vpop.f32.mrb[27].mxu0  ;;  %v1065_v62 = vpop.f32.mrb[27].mxu1  ;;  %v1905_v27 = vmul.f32 -1.442695, %v1069_v15 }
 0x38e   :  { %v1904_v25 = vmul.f32 -1.442695, %v1068_v18  ;;  %v3126_v15 = vld [vmem:[#allocation23_spill] sm:$0xff]  ;;  %v3128_v21 = vld [vmem:[#allocation25_spill] sm:$0xff] }
 0x38f   :  { %2113 = vpow2.f32 %v1903_v28  ;;  %v3129_v28 = vld [vmem:[#allocation26_spill] sm:$0xff] }
 0x390   :  { %2115 = vpow2.f32 %v1904_v25 }
 0x391   :  { %2117 = vtanh.f32 %v1070_v20 }
 0x392   :  { %2119 = vpow2.f32 %v1905_v27 }
 0x399   :  { %v2114_v29 = vpop.eup %2113 }
 0x39a   :  { %v1080_v26 = vadd.f32 1.0, %v2114_v29  ;;  %v2116_v35 = vpop.eup %2115 }
 0x39b   :  { %v1081_v53 = vadd.f32 1.0, %v2116_v35  ;;  %v2118_v6 = vpop.eup %2117 }
 0x39c   :  { %2121 = vrcp.f32 %v1080_v26  ;;  %v2120_v30 = vpop.eup %2119 }
 0x39d   :  { %2123 = vrcp.f32 %v1081_v53  ;;  %v1082_v11 = vadd.f32 1.0, %v2120_v30 }
 0x39f   :  { %2125 = vrcp.f32 %v1082_v11 }
 0x3a6   :  { %v2122_v8 = vpop.eup %2121 }
 0x3a7   :  { %v1091_v23 = vmul.f32 %v2122_v8, %v2118_v6  ;;  %v2124_v44 = vpop.eup %2123 }
 0x3a8   :  { %v1090_v7 = vmul.f32 %v2124_v44, %v2824_v31 }
 0x3a9   :  { %v2126_v13 = vpop.eup %2125 }
 0x3aa   :  { %v2866_v9 = vadd.f32 %v1091_v23, %v1090_v7 }
 0x3ac   :  { %2127 = vtanh.f32 %v2866_v9 }
 0x3b6   :  { %v2128_v24 = vpop.eup %2127 }
 0x3b7   :  { %v1094_v12 = vmul.f32 %v2128_v24, %v2126_v13 }
 0x3b9   :  { %v1102_v32 = vpack.c.bf16 %v1094_v12, %v1094_v12 }
 0x3bb   :  { %1136 = vmatmul.mubr.bf16.vlgmr.msra.gmra.mrb[28].mxu0 %v1102_v32  ;;  %1177 = vmatmul.mubr.bf16.vlgmr.msra.gmra.mrb[28].mxu1 %v1102_v32 }
 0x3bc   :  { %1222 = vmatpush1.bf16.msra.mxu0 %v2561_v36  ;;  %1263 = vmatpush1.bf16.msra.mxu1 %v2563_v37 }
 0x3bd   :  { %1223 = vmatprep.subr.bf16.mxu0 %v2567_v38  ;;  %1264 = vmatprep.subr.bf16.mxu1 %v2569_v39 }
 0x3be   :  { %1253 = vmatprep.mubr.bf16.mxu0 %v3124_v14  ;;  %1294 = vmatprep.mubr.bf16.mxu1 %v3124_v14 }
 0x3c0   :  { %1224 = vmatpush1.bf16.msra.mxu0 %v2571_v40  ;;  %1265 = vmatpush1.bf16.msra.mxu1 %v2575_v41 }
 0x3c1   :  { %1225 = vmatprep.subr.bf16.mxu0 %v2579_v42  ;;  %1266 = vmatprep.subr.bf16.mxu1 %v2581_v43 }
 0x3c4   :  { %1226 = vmatpush1.bf16.msra.mxu0 %v2585_v45  ;;  %1267 = vmatpush1.bf16.msra.mxu1 %v2587_v46 }
 0x3c5   :  { %1227 = vmatprep.subr.bf16.mxu0 %v2591_v47  ;;  %1268 = vmatprep.subr.bf16.mxu1 %v2595_v48 }
 0x3c8   :  { %1228 = vmatpush1.bf16.msra.mxu0 %v2597_v49  ;;  %1269 = vmatpush1.bf16.msra.mxu1 %v2599_v50 }
 0x3c9   :  { %1229 = vmatprep.subr.bf16.mxu0 %v2603_v51  ;;  %1270 = vmatprep.subr.bf16.mxu1 %v2607_v52 }
 0x3cc   :  { %1230 = vmatpush1.bf16.msra.mxu0 %v2611_v54  ;;  %1271 = vmatpush1.bf16.msra.mxu1 %v2613_v55 }
 0x3cd   :  { %1231 = vmatprep.subr.bf16.mxu0 %v2615_v56  ;;  %1272 = vmatprep.subr.bf16.mxu1 %v2617_v57 }
 0x3d0   :  { %1232 = vmatpush1.bf16.msra.mxu0 %v2623_v58  ;;  %1273 = vmatpush1.bf16.msra.mxu1 %v2627_v59 }
 0x3d1   :  { %1233 = vmatprep.subr.bf16.mxu0 %v2631_v60  ;;  %1274 = vmatprep.subr.bf16.mxu1 %v2633_v61 }
 0x3d4   :  { %1234 = vmatpush1.bf16.msra.mxu0 %v2639_v63  ;;  %1275 = vmatpush1.bf16.msra.mxu1 %v2641_v1 }
 0x3d5   :  { %1235 = vmatprep.subr.bf16.mxu0 %v2645_v2  ;;  %1276 = vmatprep.subr.bf16.mxu1 %v2647_v3 }
 0x3d8   :  { %1236 = vmatpush1.bf16.msra.mxu0 %v2651_v4  ;;  %1277 = vmatpush1.bf16.msra.mxu1 %v2653_v5 }
 0x3d9   :  { %1339 = vmatprep.subr.bf16.mxu0 %v2557_v33  ;;  %1380 = vmatprep.subr.bf16.mxu1 %v2559_v34 }
 0x48e   :  { %v1137_v31 = vpop.f32.mrb[28].mxu0  ;;  %v1178_v16 = vpop.f32.mrb[28].mxu1 }
 0x48f   :  { %v1185_v17 = vadd.f32 %v1137_v31, %v3126_v15  ;;  %v1187_v18 = vadd.f32 %v1178_v16, %v3127_v19  ;;  %v1139_v0 = vpop.f32.mrb[29].mxu0  ;;  %v1180_v20 = vpop.f32.mrb[29].mxu1 }
 0x490   :  { %v1186_v22 = vadd.f32 %v1139_v0, %v3128_v21  ;;  %v1188_v10 = vadd.f32 %v1180_v20, %v3129_v28  ;;  %v1141_v62 = vpop.f32.mrb[30].mxu0  ;;  %v1182_v25 = vpop.f32.mrb[30].mxu1 }
 0x491   :  { %v1906_v27 = vmul.f32 -1.442695, %v1185_v17  ;;  %v1142_v29 = vpop.f32.mrb[31].mxu0  ;;  %v1183_v26 = vpop.f32.mrb[31].mxu1  ;;  %v1908_v34 = vmul.f32 -1.442695, %v1187_v18 }
 0x492   :  { %v1907_v33 = vmul.f32 -1.442695, %v1186_v22 }
 0x493   :  { %2129 = vpow2.f32 %v1906_v27 }
 0x494   :  { %2131 = vpow2.f32 %v1907_v33 }
 0x495   :  { %2133 = vtanh.f32 %v1188_v10 }
 0x496   :  { %2135 = vpow2.f32 %v1908_v34  ;;  %v2957_v34 = vld [vmem:[#allocation13] ss:$16 sps:$4 sm:$0xff]  }
 0x49d   :  { %v2130_v35 = vpop.eup %2129 }
 0x49e   :  { %v1198_v53 = vadd.f32 1.0, %v2130_v35  ;;  %v2132_v6 = vpop.eup %2131  ;;  %v2960_v35 = vld [vmem:[#allocation13 + $0x8] ss:$16 sps:$4 sm:$0xff]  }
 0x49f   :  { %v1199_v30 = vadd.f32 1.0, %v2132_v6  ;;  %v2134_v8 = vpop.eup %2133  ;;  %v2966_v6 = vld [vmem:[#allocation13 + $0x2c] ss:$16 sps:$4 sm:$0xff]  }
 0x4a0   :  { %2137 = vrcp.f32 %v1198_v53  ;;  %v2136_v23 = vpop.eup %2135  ;;  %v2963_v53 = vld [vmem:[#allocation13 + $0x24] ss:$16 sps:$4 sm:$0xff]  }
 0x4a1   :  { %2139 = vrcp.f32 %v1199_v30  ;;  %v1200_v13 = vadd.f32 1.0, %v2136_v23  ;;  %v2971_v30 = vld [vmem:[#allocation13 + $0x20] ss:$16 sps:$4 sm:$0xff]   ;;  %v2977_v23 = vld [vmem:[#allocation13 + $0x44] ss:$16 sps:$4 sm:$0xff]  }
 0x4a3   :  { %2141 = vrcp.f32 %v1200_v13  ;;  %v2989_v13 = vld [vmem:[#allocation13 + $0x64] ss:$16 sps:$4 sm:$0xff]  }
 0x4aa   :  { %v2138_v44 = vpop.eup %2137 }
 0x4ab   :  { %v1209_v11 = vmul.f32 %v2138_v44, %v2134_v8  ;;  %v2140_v7 = vpop.eup %2139  ;;  %v2974_v8 = vld [vmem:[#allocation13 + $0x28] ss:$16 sps:$4 sm:$0xff]   ;;  %v2980_v44 = vld [vmem:[#allocation13 + $0x4c] ss:$16 sps:$4 sm:$0xff]  }
 0x4ac   :  { %v1208_v24 = vmul.f32 %v2140_v7, %v2866_v9  ;;  %v2986_v7 = vld [vmem:[#allocation13 + $0x48] ss:$16 sps:$4 sm:$0xff]  }
 0x4ad   :  { %v2142_v32 = vpop.eup %2141 }
 0x4ae   :  { %v2908_v12 = vadd.f32 %v1209_v11, %v1208_v24  ;;  %v2983_v11 = vld [vmem:[#allocation13 + $0x40] ss:$16 sps:$4 sm:$0xff]   ;;  %v2992_v24 = vld [vmem:[#allocation13 + $0x6c] ss:$16 sps:$4 sm:$0xff]  }
 0x4b0   :  { %2143 = vtanh.f32 %v2908_v12 }
 0x4ba   :  { %v2144_v31 = vpop.eup %2143 }
 0x4bb   :  { %v1212_v16 = vmul.f32 %v2144_v31, %v2142_v32  ;;  %v2998_v32 = vld [vmem:[#allocation13 + $0x68] ss:$16 sps:$4 sm:$0xff]   ;;  %v3001_v31 = vld [vmem:[#allocation13 + $0x84] ss:$16 sps:$4 sm:$0xff]  }
 0x4bd   :  { %v1220_v15 = vpack.c.bf16 %v1212_v16, %v1212_v16  ;;  %v3004_v16 = vld [vmem:[#allocation13 + $0x8c] ss:$16 sps:$4 sm:$0xff]  }
 0x4bf   :  { %1254 = vmatmul.mubr.bf16.vlgmr.msra.gmra.mrb[32].mxu0 %v1220_v15  ;;  %1295 = vmatmul.mubr.bf16.vlgmr.msra.gmra.mrb[32].mxu1 %v1220_v15  ;;  %v3007_v15 = vld [vmem:[#allocation13 + $0x80] ss:$16 sps:$4 sm:$0xff]  }
 0x4c0   :  { %1340 = vmatpush1.bf16.msra.mxu0 %v2561_v36  ;;  %1381 = vmatpush1.bf16.msra.mxu1 %v2563_v37  ;;  %v2943_v36 = vld [vmem:[#allocation13 + $0x4] ss:$16 sps:$4 sm:$0xff]   ;;  %v2946_v37 = vld [vmem:[#allocation13 + $0xc] ss:$16 sps:$4 sm:$0xff]  }
 0x4c1   :  { %1341 = vmatprep.subr.bf16.mxu0 %v2567_v38  ;;  %1382 = vmatprep.subr.bf16.mxu1 %v2569_v39 }
 0x4c2   :  { %1371 = vmatprep.mubr.bf16.mxu0 %v3124_v14  ;;  %1412 = vmatprep.mubr.bf16.mxu1 %v3124_v14 }
 0x4c4   :  { %1342 = vmatpush1.bf16.msra.mxu0 %v2571_v40  ;;  %1383 = vmatpush1.bf16.msra.mxu1 %v2575_v41  ;;  %v3130_v40 = vld [vmem:[#allocation27_spill] sm:$0xff] }
 0x4c5   :  { %1343 = vmatprep.subr.bf16.mxu0 %v2579_v42  ;;  %1384 = vmatprep.subr.bf16.mxu1 %v2581_v43  ;;  %v3131_v42 = vld [vmem:[#allocation28_spill] sm:$0xff] }
 0x4c8   :  { %1344 = vmatpush1.bf16.msra.mxu0 %v2585_v45  ;;  %1385 = vmatpush1.bf16.msra.mxu1 %v2587_v46 }
 0x4c9   :  { %1345 = vmatprep.subr.bf16.mxu0 %v2591_v47  ;;  %1386 = vmatprep.subr.bf16.mxu1 %v2595_v48  ;;  %v3132_v47 = vld [vmem:[#allocation29_spill] sm:$0xff] }
 0x4cc   :  { %1346 = vmatpush1.bf16.msra.mxu0 %v2597_v49  ;;  %1387 = vmatpush1.bf16.msra.mxu1 %v2599_v50  ;;  %v3133_v49 = vld [vmem:[#allocation30_spill] sm:$0xff] }
 0x4cd   :  { %1347 = vmatprep.subr.bf16.mxu0 %v2603_v51  ;;  %1388 = vmatprep.subr.bf16.mxu1 %v2607_v52 }
 0x4d0   :  { %1348 = vmatpush1.bf16.msra.mxu0 %v2611_v54  ;;  %1389 = vmatpush1.bf16.msra.mxu1 %v2613_v55 }
 0x4d1   :  { %1349 = vmatprep.subr.bf16.mxu0 %v2615_v56  ;;  %1390 = vmatprep.subr.bf16.mxu1 %v2617_v57 }
 0x4d4   :  { %1350 = vmatpush1.bf16.msra.mxu0 %v2623_v58  ;;  %1391 = vmatpush1.bf16.msra.mxu1 %v2627_v59 }
 0x4d5   :  { %1351 = vmatprep.subr.bf16.mxu0 %v2631_v60  ;;  %1392 = vmatprep.subr.bf16.mxu1 %v2633_v61 }
 0x4d8   :  { %1352 = vmatpush1.bf16.msra.mxu0 %v2639_v63  ;;  %1393 = vmatpush1.bf16.msra.mxu1 %v2641_v1 }
 0x4d9   :  { %1353 = vmatprep.subr.bf16.mxu0 %v2645_v2  ;;  %1394 = vmatprep.subr.bf16.mxu1 %v2647_v3 }
 0x4dc   :  { %1354 = vmatpush1.bf16.msra.mxu0 %v2651_v4  ;;  %1395 = vmatpush1.bf16.msra.mxu1 %v2653_v5 }
 0x4dd   :  { %1457 = vmatprep.subr.bf16.mxu0 %v2943_v36  ;;  %1498 = vmatprep.subr.bf16.mxu1 %v2946_v37 }
 0x592   :  { %v1255_v38 = vpop.f32.mrb[32].mxu0  ;;  %v1296_v39 = vpop.f32.mrb[32].mxu1 }
 0x593   :  { %v1303_v41 = vadd.f32 %v1255_v38, %v3130_v40  ;;  %v1305_v43 = vadd.f32 %v1296_v39, %v3131_v42  ;;  %v1257_v45 = vpop.f32.mrb[33].mxu0  ;;  %v1298_v46 = vpop.f32.mrb[33].mxu1  ;;  %v3010_v38 = vld [vmem:[#allocation13 + $0x88] ss:$16 sps:$4 sm:$0xff]   ;;  %v3013_v39 = vld [vmem:[#allocation13 + $0xa4] ss:$16 sps:$4 sm:$0xff]  }
 0x594   :  { %v1304_v48 = vadd.f32 %v1257_v45, %v3132_v47  ;;  %v1306_v50 = vadd.f32 %v1298_v46, %v3133_v49  ;;  %v1259_v51 = vpop.f32.mrb[34].mxu0  ;;  %v1300_v52 = vpop.f32.mrb[34].mxu1  ;;  %v3016_v40 = vld [vmem:[#allocation13 + $0xac] ss:$16 sps:$4 sm:$0xff]   ;;  %v3134_v42 = vld [vmem:[#allocation31_spill] sm:$0xff]  ;;  %v3136_v46 = vld [vmem:[#allocation33_spill] sm:$0xff] }
 0x595   :  { %v1909_v54 = vmul.f32 -1.442695, %v1303_v41  ;;  %v1260_v55 = vpop.f32.mrb[35].mxu0  ;;  %v1301_v56 = vpop.f32.mrb[35].mxu1  ;;  %v1911_v58 = vmul.f32 -1.442695, %v1305_v43 }
 0x596   :  { %v1910_v57 = vmul.f32 -1.442695, %v1304_v48  ;;  %v3019_v41 = vld [vmem:[#allocation13 + $0xa0] ss:$16 sps:$4 sm:$0xff]   ;;  %v3135_v43 = vld [vmem:[#allocation32_spill] sm:$0xff]  ;;  %v3137_v47 = vld [vmem:[#allocation34_spill] sm:$0xff] }
 0x597   :  { %2145 = vpow2.f32 %v1909_v54 }
 0x598   :  { %2147 = vpow2.f32 %v1910_v57 }
 0x599   :  { %2149 = vtanh.f32 %v1306_v50 }
 0x59a   :  { %2151 = vpow2.f32 %v1911_v58 }
 0x5a1   :  { %v2146_v9 = vpop.eup %2145 }
 0x5a2   :  { %v1316_v17 = vadd.f32 1.0, %v2146_v9  ;;  %v2148_v19 = vpop.eup %2147 }
 0x5a3   :  { %v1317_v18 = vadd.f32 1.0, %v2148_v19  ;;  %v2150_v0 = vpop.eup %2149 }
 0x5a4   :  { %2153 = vrcp.f32 %v1316_v17  ;;  %v2152_v20 = vpop.eup %2151 }
 0x5a5   :  { %2155 = vrcp.f32 %v1317_v18  ;;  %v1318_v10 = vadd.f32 1.0, %v2152_v20 }
 0x5a7   :  { %2157 = vrcp.f32 %v1318_v10  ;;  %v2233_v10 = vld [vmem:[#allocation13 + $0xc4] ss:$16 sps:$4 sm:$0xff]  }
 0x5ae   :  { %v2154_v21 = vpop.eup %2153 }
 0x5af   :  { %v1327_v22 = vmul.f32 %v2154_v21, %v2150_v0  ;;  %v2156_v28 = vpop.eup %2155 }
 0x5b0   :  { %v1326_v62 = vmul.f32 %v2156_v28, %v2908_v12  ;;  %v2995_v12 = vld [vmem:[#allocation13 + $0x60] ss:$16 sps:$4 sm:$0xff]  }
 0x5b1   :  { %v2158_v27 = vpop.eup %2157 }
 0x5b2   :  { %v2954_v25 = vadd.f32 %v1327_v22, %v1326_v62  ;;  %v2234_v62 = vld [vmem:[#allocation13 + $0xcc] ss:$16 sps:$4 sm:$0xff]  }
 0x5b4   :  { %2159 = vtanh.f32 %v2954_v25 }
 0x5be   :  { %v2160_v29 = vpop.eup %2159 }
 0x5bf   :  { %v1330_v26 = vmul.f32 %v2160_v29, %v2158_v27  ;;  %v2236_v27 = vld [vmem:[#allocation13 + $0xc8] ss:$16 sps:$4 sm:$0xff]   ;;  %v2237_v29 = vld [vmem:[#allocation13 + $0xe4] ss:$16 sps:$4 sm:$0xff]  }
 0x5c1   :  { %v1338_v33 = vpack.c.bf16 %v1330_v26, %v1330_v26  ;;  %v2238_v26 = vld [vmem:[#allocation13 + $0xec] ss:$16 sps:$4 sm:$0xff]  }
 0x5c3   :  { %1372 = vmatmul.mubr.bf16.vlgmr.msra.gmra.mrb[36].mxu0 %v1338_v33  ;;  %1413 = vmatmul.mubr.bf16.vlgmr.msra.gmra.mrb[36].mxu1 %v1338_v33  ;;  %v2239_v33 = vld [vmem:[#allocation13 + $0xe0] ss:$16 sps:$4 sm:$0xff]  }
 0x5c4   :  { %1458 = vmatpush1.bf16.msra.mxu0 %v2957_v34  ;;  %1499 = vmatpush1.bf16.msra.mxu1 %v2960_v35 }
 0x5c5   :  { %1459 = vmatprep.subr.bf16.mxu0 %v2963_v53  ;;  %1500 = vmatprep.subr.bf16.mxu1 %v2966_v6 }
 0x5c6   :  { %1489 = vmatprep.mubr.bf16.mxu0 %v3124_v14  ;;  %1530 = vmatprep.mubr.bf16.mxu1 %v3124_v14 }
 0x5c8   :  { %1460 = vmatpush1.bf16.msra.mxu0 %v2971_v30  ;;  %1501 = vmatpush1.bf16.msra.mxu1 %v2974_v8 }
 0x5c9   :  { %1461 = vmatprep.subr.bf16.mxu0 %v2977_v23  ;;  %1502 = vmatprep.subr.bf16.mxu1 %v2980_v44 }
 0x5cc   :  { %1462 = vmatpush1.bf16.msra.mxu0 %v2983_v11  ;;  %1503 = vmatpush1.bf16.msra.mxu1 %v2986_v7 }
 0x5cd   :  { %1463 = vmatprep.subr.bf16.mxu0 %v2989_v13  ;;  %1504 = vmatprep.subr.bf16.mxu1 %v2992_v24 }
 0x5d0   :  { %1464 = vmatpush1.bf16.msra.mxu0 %v2995_v12  ;;  %1505 = vmatpush1.bf16.msra.mxu1 %v2998_v32 }
 0x5d1   :  { %1465 = vmatprep.subr.bf16.mxu0 %v3001_v31  ;;  %1506 = vmatprep.subr.bf16.mxu1 %v3004_v16 }
 0x5d4   :  { %1466 = vmatpush1.bf16.msra.mxu0 %v3007_v15  ;;  %1507 = vmatpush1.bf16.msra.mxu1 %v3010_v38 }
 0x5d5   :  { %1467 = vmatprep.subr.bf16.mxu0 %v3013_v39  ;;  %1508 = vmatprep.subr.bf16.mxu1 %v3016_v40 }
 0x5d8   :  { %1468 = vmatpush1.bf16.msra.mxu0 %v3019_v41  ;;  %1509 = vmatpush1.bf16.msra.mxu1 %v2627_v59 }
 0x5d9   :  { %1469 = vmatprep.subr.bf16.mxu0 %v2631_v60  ;;  %1510 = vmatprep.subr.bf16.mxu1 %v2633_v61 }
 0x5dc   :  { %1470 = vmatpush1.bf16.msra.mxu0 %v2639_v63  ;;  %1511 = vmatpush1.bf16.msra.mxu1 %v2641_v1 }
 0x5dd   :  { %1471 = vmatprep.subr.bf16.mxu0 %v2645_v2  ;;  %1512 = vmatprep.subr.bf16.mxu1 %v2647_v3 }
 0x5e0   :  { %1472 = vmatpush1.bf16.msra.mxu0 %v2651_v4  ;;  %1513 = vmatpush1.bf16.msra.mxu1 %v2653_v5 }
 0x5e1   :  { %1575 = vmatprep.subr.bf16.mxu0 %v2943_v36  ;;  %1616 = vmatprep.subr.bf16.mxu1 %v2946_v37 }
 0x696   :  { %v1373_v59 = vpop.f32.mrb[36].mxu0  ;;  %v1414_v60 = vpop.f32.mrb[36].mxu1 }
 0x697   :  { %v1421_v61 = vadd.f32 %v1373_v59, %v3134_v42  ;;  %v1423_v63 = vadd.f32 %v1414_v60, %v3135_v43  ;;  %v1375_v45 = vpop.f32.mrb[37].mxu0  ;;  %v1416_v1 = vpop.f32.mrb[37].mxu1 }
 0x698   :  { %v1422_v2 = vadd.f32 %v1375_v45, %v3136_v46  ;;  %v1424_v3 = vadd.f32 %v1416_v1, %v3137_v47  ;;  %v1377_v48 = vpop.f32.mrb[38].mxu0  ;;  %v1418_v4 = vpop.f32.mrb[38].mxu1 }
 0x699   :  { %v1912_v49 = vmul.f32 -1.442695, %v1421_v61  ;;  %v1378_v5 = vpop.f32.mrb[39].mxu0  ;;  %v1419_v50 = vpop.f32.mrb[39].mxu1  ;;  %v1914_v37 = vmul.f32 -1.442695, %v1423_v63 }
 0x69a   :  { %v1913_v36 = vmul.f32 -1.442695, %v1422_v2  ;;  %v2073_v5 = vld [vmem:[#allocation14] sm:$0xff]   ;;  %v2416_v50 = vmov 0.0  }
 0x69b   :  { %2161 = vpow2.f32 %v1912_v49 }
 0x69c   :  { %2163 = vpow2.f32 %v1913_v36  ;;  %v2074_v36 = vld [vmem:[#allocation14 + $0x8] sm:$0xff]  }
 0x69d   :  { %2165 = vtanh.f32 %v1424_v3 }
 0x69e   :  { %2167 = vpow2.f32 %v1914_v37  ;;  %v2075_v37 = vld [vmem:[#allocation14 + $0x10] sm:$0xff]  }
 0x6a5   :  { %v2162_v51 = vpop.eup %2161 }
 0x6a6   :  { %v1434_v52 = vadd.f32 1.0, %v2162_v51  ;;  %v2164_v54 = vpop.eup %2163  ;;  %v2076_v51 = vld [vmem:[#allocation14 + $0x18] sm:$0xff]  }
 0x6a7   :  { %v1435_v55 = vadd.f32 1.0, %v2164_v54  ;;  %v2166_v56 = vpop.eup %2165  ;;  %v2078_v54 = vld [vmem:[#allocation14 + $0x28] sm:$0xff]  }
 0x6a8   :  { %2169 = vrcp.f32 %v1434_v52  ;;  %v2168_v57 = vpop.eup %2167  ;;  %v2077_v52 = vld [vmem:[#allocation14 + $0x20] sm:$0xff]  }
 0x6a9   :  { %2171 = vrcp.f32 %v1435_v55  ;;  %v1436_v19 = vadd.f32 1.0, %v2168_v57  ;;  %v2079_v55 = vld [vmem:[#allocation14 + $0x30] sm:$0xff]  }
 0x6ab   :  { %2173 = vrcp.f32 %v1436_v19  ;;  %v3143_v19 = vld [vmem:[#allocation40_spill] sm:$0xff] }
 0x6b2   :  { %v2170_v58 = vpop.eup %2169 }
 0x6b3   :  { %v1445_v9 = vmul.f32 %v2170_v58, %v2166_v56  ;;  %v2172_v17 = vpop.eup %2171  ;;  %v2080_v56 = vld [vmem:[#allocation14 + $0x38] sm:$0xff]  }
 0x6b4   :  { %v1444_v18 = vmul.f32 %v2172_v17, %v2954_v25  ;;  %v2235_v25 = vld [vmem:[#allocation13 + $0xc0] ss:$16 sps:$4 sm:$0xff]  }
 0x6b5   :  { %v2174_v20 = vpop.eup %2173 }
 0x6b6   :  { %v3038_v0 = vadd.f32 %v1445_v9, %v1444_v18  ;;  %v3142_v9 = vld [vmem:[#allocation39_spill] sm:$0xff] }
 0x6b8   :  { %2175 = vtanh.f32 %v3038_v0 }
 0x6c2   :  { %v2176_v21 = vpop.eup %2175 }
 0x6c3   :  { %v1448_v22 = vmul.f32 %v2176_v21, %v2174_v20  ;;  %v3144_v21 = vld [vmem:[#allocation41_spill] sm:$0xff] }
 0x6c5   :  { %v1456_v28 = vpack.c.bf16 %v1448_v22, %v1448_v22 }
 0x6c7   :  { %1490 = vmatmul.mubr.bf16.vlgmr.msra.gmra.mrb[40].mxu0 %v1456_v28  ;;  %1531 = vmatmul.mubr.bf16.vlgmr.msra.gmra.mrb[40].mxu1 %v1456_v28  ;;  %v3145_v28 = vld [vmem:[#allocation42_spill] sm:$0xff] }
 0x6c8   :  { %1576 = vmatpush1.bf16.msra.mxu0 %v2957_v34  ;;  %1617 = vmatpush1.bf16.msra.mxu1 %v2960_v35  ;;  %v2240_v34 = vld [vmem:[#allocation13 + $0xe8] ss:$16 sps:$4 sm:$0xff]  }
 0x6c9   :  { %1577 = vmatprep.subr.bf16.mxu0 %v2963_v53  ;;  %1618 = vmatprep.subr.bf16.mxu1 %v2966_v6  ;;  %v3138_v6 = vld [vmem:[#allocation35_spill] sm:$0xff] }
 0x6ca   :  { %1607 = vmatprep.mubr.bf16.mxu0 %v3124_v14  ;;  %1648 = vmatprep.mubr.bf16.mxu1 %v3124_v14  ;;  %v2232_v14 = vld [vmem:[#allocation13 + $0xa8] ss:$16 sps:$4 sm:$0xff]  }
 0x6cc   :  { %1578 = vmatpush1.bf16.msra.mxu0 %v2971_v30  ;;  %1619 = vmatpush1.bf16.msra.mxu1 %v2974_v8  ;;  %v3139_v8 = vld [vmem:[#allocation36_spill] sm:$0xff] }
 0x6cd   :  { %1579 = vmatprep.subr.bf16.mxu0 %v2977_v23  ;;  %1620 = vmatprep.subr.bf16.mxu1 %v2980_v44 }
 0x6d0   :  { %1580 = vmatpush1.bf16.msra.mxu0 %v2983_v11  ;;  %1621 = vmatpush1.bf16.msra.mxu1 %v2986_v7  ;;  %v3140_v7 = vld [vmem:[#allocation37_spill] sm:$0xff] }
 0x6d1   :  { %1581 = vmatprep.subr.bf16.mxu0 %v2989_v13  ;;  %1622 = vmatprep.subr.bf16.mxu1 %v2992_v24  ;;  %v3141_v24 = vld [vmem:[#allocation38_spill] sm:$0xff] }
 0x6d4   :  { %1582 = vmatpush1.bf16.msra.mxu0 %v2995_v12  ;;  %1623 = vmatpush1.bf16.msra.mxu1 %v2998_v32 }
 0x6d5   :  { %1583 = vmatprep.subr.bf16.mxu0 %v3001_v31  ;;  %1624 = vmatprep.subr.bf16.mxu1 %v3004_v16 }
 0x6d8   :  { %1584 = vmatpush1.bf16.msra.mxu0 %v3007_v15  ;;  %1625 = vmatpush1.bf16.msra.mxu1 %v3010_v38 }
 0x6d9   :  { %1585 = vmatprep.subr.bf16.mxu0 %v3013_v39  ;;  %1626 = vmatprep.subr.bf16.mxu1 %v3016_v40 }
 0x6dc   :  { %1586 = vmatpush1.bf16.msra.mxu0 %v3019_v41  ;;  %1627 = vmatpush1.bf16.msra.mxu1 %v2232_v14 }
 0x6dd   :  { %1587 = vmatprep.subr.bf16.mxu0 %v2233_v10  ;;  %1628 = vmatprep.subr.bf16.mxu1 %v2234_v62 }
 0x6e0   :  { %1588 = vmatpush1.bf16.msra.mxu0 %v2235_v25  ;;  %1629 = vmatpush1.bf16.msra.mxu1 %v2236_v27 }
 0x6e1   :  { %1589 = vmatprep.subr.bf16.mxu0 %v2237_v29  ;;  %1630 = vmatprep.subr.bf16.mxu1 %v2238_v26 }
 0x6e4   :  { %1590 = vmatpush1.bf16.msra.mxu0 %v2239_v33  ;;  %1631 = vmatpush1.bf16.msra.mxu1 %v2240_v34 }
 0x6e5   :  { %1939 = vmatprep.subr.bf16.mxu0 %v2416_v50 }
 0x79a   :  { %v1491_v35 = vpop.f32.mrb[40].mxu0  ;;  %v1532_v53 = vpop.f32.mrb[40].mxu1 }
 0x79b   :  { %v1539_v30 = vadd.f32 %v1491_v35, %v3138_v6  ;;  %v1541_v23 = vadd.f32 %v1532_v53, %v3139_v8  ;;  %v1493_v44 = vpop.f32.mrb[41].mxu0  ;;  %v1534_v11 = vpop.f32.mrb[41].mxu1 }
 0x79c   :  { %v1540_v13 = vadd.f32 %v1493_v44, %v3140_v7  ;;  %v1542_v12 = vadd.f32 %v1534_v11, %v3141_v24  ;;  %v1495_v32 = vpop.f32.mrb[42].mxu0  ;;  %v1536_v31 = vpop.f32.mrb[42].mxu1 }
 0x79d   :  { %v1915_v16 = vmul.f32 -1.442695, %v1539_v30  ;;  %v1496_v15 = vpop.f32.mrb[43].mxu0  ;;  %v1537_v38 = vpop.f32.mrb[43].mxu1  ;;  %v1917_v40 = vmul.f32 -1.442695, %v1541_v23 }
 0x79e   :  { %v1916_v39 = vmul.f32 -1.442695, %v1540_v13  ;;  %v1921_v15 = vld [vmem:[%s3099_s7] ss:$0 sm:$0xff] }
 0x79f   :  { %2177 = vpow2.f32 %v1915_v16 }
 0x7a0   :  { %2179 = vpow2.f32 %v1916_v39 }
 0x7a1   :  { %2181 = vtanh.f32 %v1542_v12 }
 0x7a2   :  { %2183 = vpow2.f32 %v1917_v40 }
 0x7a9   :  { %v2178_v41 = vpop.eup %2177 }
 0x7aa   :  { %v1552_v59 = vadd.f32 1.0, %v2178_v41  ;;  %v2180_v60 = vpop.eup %2179 }
 0x7ab   :  { %v1553_v42 = vadd.f32 1.0, %v2180_v60  ;;  %v2182_v61 = vpop.eup %2181 }
 0x7ac   :  { %2185 = vrcp.f32 %v1552_v59  ;;  %v2184_v43 = vpop.eup %2183 }
 0x7ad   :  { %2187 = vrcp.f32 %v1553_v42  ;;  %v1554_v46 = vadd.f32 1.0, %v2184_v43 }
 0x7af   :  { %2189 = vrcp.f32 %v1554_v46 }
 0x7b6   :  { %v2186_v63 = vpop.eup %2185 }
 0x7b7   :  { %v1563_v45 = vmul.f32 %v2186_v63, %v2182_v61  ;;  %v2188_v1 = vpop.eup %2187 }
 0x7b8   :  { %v1562_v2 = vmul.f32 %v2188_v1, %v3038_v0 }
 0x7b9   :  { %v2190_v3 = vpop.eup %2189 }
 0x7ba   :  { %v3069_v47 = vadd.f32 %v1563_v45, %v1562_v2 }
 0x7bc   :  { %2191 = vtanh.f32 %v3069_v47 }
 0x7c6   :  { %v2192_v48 = vpop.eup %2191 }
 0x7c7   :  { %v1566_v4 = vmul.f32 %v2192_v48, %v2190_v3 }
 0x7c9   :  { %v1574_v49 = vpack.c.bf16 %v1566_v4, %v1566_v4 }
 0x7cb   :  { %1608 = vmatmul.mubr.bf16.vlgmr.msra.gmra.mrb[44].mxu0 %v1574_v49  ;;  %1649 = vmatmul.mubr.bf16.vlgmr.msra.gmra.mrb[44].mxu1 %v1574_v49 }
 0x7cc   :  { %1940 = vmatpush3.bf16.msra.mxu0 %v2073_v5  ;;  %1955 = vmatprep.mubr.msk.bf16.mxu0 %vm2417_vm0, %v2416_v50 }
 0x7cd   :  { %1941 = vmatprep.subr.bf16.mxu0 %v2416_v50 }
 0x7d0   :  { %1942 = vmatpush3.bf16.msra.mxu0 %v2074_v36 }
 0x7d1   :  { %1943 = vmatprep.subr.bf16.mxu0 %v2416_v50 }
 0x7d4   :  { %1944 = vmatpush3.bf16.msra.mxu0 %v2075_v37 }
 0x7d5   :  { %1945 = vmatprep.subr.bf16.mxu0 %v2416_v50 }
 0x7d8   :  { %1946 = vmatpush3.bf16.msra.mxu0 %v2076_v51 }
 0x7d9   :  { %1947 = vmatprep.subr.bf16.mxu0 %v2416_v50 }
 0x7dc   :  { %1948 = vmatpush3.bf16.msra.mxu0 %v2077_v52 }
 0x7dd   :  { %1949 = vmatprep.subr.bf16.mxu0 %v2416_v50 }
 0x7e0   :  { %1950 = vmatpush3.bf16.msra.mxu0 %v2078_v54 }
 0x7e1   :  { %1951 = vmatprep.subr.bf16.mxu0 %v2416_v50 }
 0x7e4   :  { %1952 = vmatpush3.bf16.msra.mxu0 %v2079_v55 }
 0x7e5   :  { %1953 = vmatprep.subr.bf16.mxu0 %v2416_v50 }
 0x7e8   :  { %1954 = vmatpush3.bf16.msra.mxu0 %v2080_v56 }
 0x89e   :  { %v1609_v57 = vpop.f32.mrb[44].mxu0  ;;  %v1650_v58 = vpop.f32.mrb[44].mxu1 }
 0x89f   :  { %v1657_v17 = vadd.f32 %v1609_v57, %v3142_v9  ;;  %v1659_v18 = vadd.f32 %v1650_v58, %v3143_v19  ;;  %v1611_v0 = vpop.f32.mrb[45].mxu0  ;;  %v1652_v20 = vpop.f32.mrb[45].mxu1 }
 0x8a0   :  { %v1658_v22 = vadd.f32 %v1611_v0, %v3144_v21  ;;  %v1660_v14 = vadd.f32 %v1652_v20, %v3145_v28  ;;  %v1613_v10 = vpop.f32.mrb[46].mxu0  ;;  %v1654_v62 = vpop.f32.mrb[46].mxu1 }
 0x8a1   :  { %v1918_v25 = vmul.f32 -1.442695, %v1657_v17  ;;  %v1614_v27 = vpop.f32.mrb[47].mxu0  ;;  %v1655_v29 = vpop.f32.mrb[47].mxu1  ;;  %v1920_v33 = vmul.f32 -1.442695, %v1659_v18 }
 0x8a2   :  { %v1919_v26 = vmul.f32 -1.442695, %v1658_v22 }
 0x8a3   :  { %2193 = vpow2.f32 %v1918_v25 }
 0x8a4   :  { %2195 = vpow2.f32 %v1919_v26 }
 0x8a5   :  { %2197 = vtanh.f32 %v1660_v14 }
 0x8a6   :  { %2199 = vpow2.f32 %v1920_v33 }
 0x8ad   :  { %v2194_v34 = vpop.eup %2193 }
 0x8ae   :  { %v1670_v35 = vadd.f32 1.0, %v2194_v34  ;;  %v2196_v53 = vpop.eup %2195 }
 0x8af   :  { %v1671_v6 = vadd.f32 1.0, %v2196_v53  ;;  %v2198_v30 = vpop.eup %2197 }
 0x8b0   :  { %2201 = vrcp.f32 %v1670_v35  ;;  %v2200_v8 = vpop.eup %2199 }
 0x8b1   :  { %2203 = vrcp.f32 %v1671_v6  ;;  %v1672_v7 = vadd.f32 1.0, %v2200_v8 }
 0x8b3   :  { %2205 = vrcp.f32 %v1672_v7 }
 0x8ba   :  { %v2202_v23 = vpop.eup %2201 }
 0x8bb   :  { %v1681_v44 = vmul.f32 %v2202_v23, %v2198_v30  ;;  %v2204_v11 = vpop.eup %2203 }
 0x8bc   :  { %v1680_v13 = vmul.f32 %v2204_v11, %v3069_v47 }
 0x8bd   :  { %v2206_v12 = vpop.eup %2205 }
 0x8be   :  { %v1682_v24 = vadd.f32 %v1681_v44, %v1680_v13 }
 0x8c0   :  { %2207 = vtanh.f32 %v1682_v24 }
 0x8ca   :  { %v2208_v32 = vpop.eup %2207 }
 0x8cb   :  { %v1684_v31 = vmul.f32 %v2208_v32, %v2206_v12 }
 0x8cd   :  { %v1691_v16 = vpack.c.bf16 %v1684_v31, %v1684_v31 }
 0x8cf   :  { %1956 = vmatmul.mubr.bf16.vlgmr.msra.gmra.mrb[48].mxu0 %v1691_v16 }
 0x9a2   :  { %v1797_v38 = vpop.f32.mrb[48].mxu0 }
 0x9a3   :  { %v1798_v39 = vadd.f32 %v1921_v15, %v1797_v38  ;;  %v1957_v40 = vpop.f32.mrb[49].mxu0 }
 0x9a4   :  { %v1800_v41 = vpop.f32.mrb[50].mxu0 }
 0x9a5   :  { %1803 = vst [vmem:[#allocation16] sm:$0xff] %v1798_v39  ;;  %v1958_v59 = vpop.f32.mrb[51].mxu0 }
 0x9a6   :  { %2384 = shalt.err (!%p2381_p10)
}
 0x9a7   :  { %s2385_s7 = scalar_lea.hbm %s3100_s8, 128 }
 0x9a8   :  { %p2386_p11 = scmp.ne.s32.totalorder %s3100_s8, %s2385_s7  ;;  %p2389_p12 = scmp.lt.u32.totalorder %s2385_s7, %s3100_s8 }
 0x9aa   :  { %p2391_p13 = pnand %p2389_p12, %p2386_p11 }
 0x9ac   :  { %2394 = shalt.err (!%p2391_p13)
}
 0x9ad   :  { %1813 = dma.vmem_to_hbm [thread:$0]  %s1811_s24, 128, %s3100_s8, [#allocation7]  }
 0x9ae   :  { %2403 = dma.done.wait [#allocation7], 128  }
 0x9af   :  { %2404 = vsyncadd [#allocation7], 4294967168 }
 0x9b0   :  { %1817 = vsyncpa [#allocation6], 1 }
 0x9b1   :  { %1818 = vsyncpa [#allocation9], 1 }
 0x9b2   :  { %1819 = vsyncpa [#allocation12], 1 }
 0x9b3   :  { %1820 = vsyncpa [#allocation15], 1 }
 0x9b4   :  { %1821 = vsyncpa [#allocation7], 1 }

</bundles_post_ra>
